<compile_context>
chip_gen: v7x
topology: tpu7x:2x2x1
jax: 0.10.0
libtpu: 0.0.40
codegen_flags: <defaults>
</compile_context>

<pallas_src>
import functools

import jax
import jax.numpy as jnp
from jax.experimental import pallas as pl
from jax.experimental.pallas import tpu as pltpu


def _round_up(x, m):
    return (x + m - 1) // m * m


def _sigmoid_1eup(x):
    # sigmoid(x) == 0.5 * tanh(x / 2) + 0.5 : one EUP push on the serial chain.
    return 0.5 * jnp.tanh(0.5 * x) + 0.5


def _gru_head_kernel(x_ref, h0_ref, wi_ref, bi_ref, wh_ref, bhn_ref,
                     wout_ref, bout_ref, out_ref, hn_ref, *, seq_len):
    """GRU recurrence + linear head for one batch block.

    x_ref    : (T*Bb, H)  block-local time-major inputs (row = t*Bb + b), f32
    h0_ref   : (Bb, H)    initial hidden state, f32
    wi_ref   : (H, 3*GP)  [Wir.T | Wiz.T | Win.T], per-gate 128-lane blocks, bf16
    bi_ref   : (1, 3*GP)  [bir+bhr | biz+bhz | bin], f32
    wh_ref   : (H, 3*GP)  [Whr.T | Whz.T | Whn.T] (rows = true H), bf16
    bhn_ref  : (1, H)     bhn (must stay inside r * (.)), f32
    wout_ref : (H, OP)    Linear head weight (transposed, lane-padded), bf16
    bout_ref : (1, OP)    Linear head bias (lane-padded), f32
    out_ref  : (Bb, OP)   Linear(h_T), lane-dense store
    hn_ref   : (Bb, GP)   final hidden state, lane-dense store
    """
    T = seq_len
    Bb, H = h0_ref.shape
    GP = wh_ref.shape[1] // 3

    # (1) Hoisted input-side projection for every (t, b) at once: ONE MXU
    # matmul, off the serial recurrence chain.
    gx = jnp.dot(x_ref[...].astype(jnp.bfloat16), wi_ref[...],
                 preferred_element_type=jnp.float32) + bi_ref[...]  # (T*Bb, 3GP)

    # (5) Pre-extract per-step, per-gate slices (independent of h).  Row slices
    # are contiguous sublane groups (Bb % 8 == 0); lane offsets 0 / GP / 2*GP
    # are vreg-aligned and widths are the true hidden size H.
    gxr = [gx[t * Bb:(t + 1) * Bb, 0:H] for t in range(T)]
    gxz = [gx[t * Bb:(t + 1) * Bb, GP:GP + H] for t in range(T)]
    gxn = [gx[t * Bb:(t + 1) * Bb, 2 * GP:2 * GP + H] for t in range(T)]

    bhn = jnp.broadcast_to(bhn_ref[...], (Bb, H))    # hoisted broadcast
    h = h0_ref[...]                                  # (Bb, H) f32 carried state

    # T is small and static -> fully unrolled serial recurrence.
    for t in range(T):
        # (2)+(7) one MXU matmul per step over the true H-deep contraction;
        # RHS streamed from VMEM each step (not hoisted into a live value).
        gh = jnp.dot(h.astype(jnp.bfloat16), wh_ref[...],
                     preferred_element_type=jnp.float32)          # (Bb, 3*GP)
        # torch.nn.GRU cell, gate order (r, z, n):
        r = _sigmoid_1eup(gxr[t] + gh[:, 0:H])
        z = _sigmoid_1eup(gxz[t] + gh[:, GP:GP + H])
        n = jnp.tanh(gxn[t] + r * (gh[:, 2 * GP:2 * GP + H] + bhn))
        h = n + z * (h - n)                  # == (1 - z) * n + z * h

    # (6) Lane-dense (128-wide) full-tile stores; wrapper slices to O / H.
    if GP > H:
        hn_full = jnp.concatenate(
            [h, jnp.zeros((Bb, GP - H), jnp.float32)], axis=1)
    else:
        hn_full = h
    hn_ref[...] = hn_full
    out_ref[...] = (jnp.dot(h.astype(jnp.bfloat16), wout_ref[...],
                            preferred_element_type=jnp.float32)
                    + bout_ref[...])


def prepare_params(params, *, hidden_size, out_size):
    """One-time conversion of torch-style GRU/Linear params to kernel layout."""
    H, O = hidden_size, out_size
    GP = max(128, _round_up(H, 128))      # lane-aligned per-gate block width
    OP = max(128, _round_up(O, 128))      # lane-aligned head output width
    w_ih, w_hh, b_ih, b_hh, w_out, b_out = params

    def split3(a):
        return a[0:H], a[H:2 * H], a[2 * H:3 * H]

    wir, wiz, win = split3(w_ih)          # each (H, H), torch (out, in) layout
    whr, whz, whn = split3(w_hh)
    bir, biz, bin_ = split3(b_ih)
    bhr, bhz, bhn = split3(b_hh)

    def pad_cols(m, width):               # torch (out, in) -> (in, width)
        return jnp.pad(m.T, ((0, 0), (0, width - m.shape[0])))

    def pad_vec(v, width):                # (n,) -> (1, width)
        return jnp.pad(v[None, :], ((0, 0), (0, width - v.shape[0])))

    wi_cat = jnp.concatenate(
        [pad_cols(wir, GP), pad_cols(wiz, GP), pad_cols(win, GP)], axis=1)
    wh_cat = jnp.concatenate(
        [pad_cols(whr, GP), pad_cols(whz, GP), pad_cols(whn, GP)], axis=1)
    b_in = jnp.concatenate(
        [pad_vec(bir + bhr, GP), pad_vec(biz + bhz, GP), pad_vec(bin_, GP)],
        axis=1)
    bf16, f32 = jnp.bfloat16, jnp.float32
    return dict(
        wi=wi_cat.astype(bf16),                       # (H, 3*GP) bf16
        wh=wh_cat.astype(bf16),                       # (H, 3*GP) bf16
        bi=b_in.astype(f32),                          # (1, 3*GP) f32
        bhn=bhn[None, :].astype(f32),                 # (1, H)    f32
        wout=pad_cols(w_out, OP).astype(bf16),        # (H, OP)   bf16
        bout=pad_vec(b_out, OP).astype(f32),          # (1, OP)   f32
        gate_pad=GP, out_pad=OP, hidden=H, out_size=O)


def gru_head_batched(x, h0, prepped, *, block_batch=None):
    """Run the GRU + head on B independent sequences in ONE pallas_call.

    x  : (B, T, H) sequences;  h0 : (B, H) initial hidden states.
    Returns (out (B, O), hn (B, H)).
    """
    B, T, H = x.shape
    assert H == prepped["hidden"]
    GP, OP, O = prepped["gate_pad"], prepped["out_pad"], prepped["out_size"]

    # Batch rows feed the MXU directly; extra blocks go on a "parallel" grid
    # axis (both TensorCores on v7x megacore when grid > 1).
    if block_batch is None:
        bblk = min(_round_up(B, 8), 128)
    else:
        assert block_batch % 8 == 0 and block_batch <= 128
        bblk = block_batch
    b_pad = _round_up(B, bblk)
    grid_b = b_pad // bblk

    xf = x.astype(jnp.float32)
    h0f = h0.astype(jnp.float32)
    if b_pad != B:
        xf = jnp.pad(xf, ((0, b_pad - B), (0, 0), (0, 0)))
        h0f = jnp.pad(h0f, ((0, b_pad - B), (0, 0)))
    # Per-block time-major row layout: row (g, t, b) -> (g*T + t)*bblk + b, so
    # each grid step sees a contiguous (T*bblk, H) slab and every timestep is
    # a contiguous, sublane-aligned group of rows.
    x_rows = jnp.transpose(xf.reshape(grid_b, bblk, T, H),
                           (0, 2, 1, 3)).reshape(grid_b * T * bblk, H)

    def full_spec(shape):
        return pl.BlockSpec(shape, lambda i: (0,) * len(shape))

    cost = pl.CostEstimate(
        flops=int(4 * T * b_pad * H * 3 * GP + 2 * b_pad * H * OP),
        transcendentals=int(3 * T * b_pad * H),
        bytes_accessed=int(
            4 * (x_rows.size + h0f.size + b_pad * (OP + GP))
            + 2 * (prepped["wi"].size + prepped["wh"].size
                   + prepped["wout"].size)
            + 4 * (prepped["bi"].size + prepped["bhn"].size
                   + prepped["bout"].size)))

    kernel = functools.partial(_gru_head_kernel, seq_len=T)
    out_p, hn_p = pl.pallas_call(
        kernel,
        grid=(grid_b,),
        in_specs=[
            pl.BlockSpec((T * bblk, H), lambda i: (i, 0)),   # x (block rows)
            pl.BlockSpec((bblk, H), lambda i: (i, 0)),       # h0
            full_spec((H, 3 * GP)),                          # wi  (bf16)
            full_spec((1, 3 * GP)),                          # bi
            full_spec((H, 3 * GP)),                          # wh  (bf16)
            full_spec((1, H)),                               # bhn
            full_spec((H, OP)),                              # wout (bf16)
            full_spec((1, OP)),                              # bout
        ],
        out_specs=(pl.BlockSpec((bblk, OP), lambda i: (i, 0)),
                   pl.BlockSpec((bblk, GP), lambda i: (i, 0))),
        out_shape=(jax.ShapeDtypeStruct((b_pad, OP), jnp.float32),
                   jax.ShapeDtypeStruct((b_pad, GP), jnp.float32)),
        compiler_params=pltpu.CompilerParams(
            dimension_semantics=("parallel",)),
        cost_estimate=cost,
    )(x_rows, h0f, prepped["wi"], prepped["bi"], prepped["wh"],
      prepped["bhn"], prepped["wout"], prepped["bout"])

    return out_p[:B, :O], hn_p[:B, :H]


def analy_with_gru_forward(word_inputs, hidden, prepped, *, hidden_size,
                           out_size, batch_size=1):
    """Mirrors AnalyWithGRU.forward: returns (output[:, -1, :], hidden_n).

    word_inputs: anything that views to (batch_size, -1, hidden_size)
    hidden:      (n_layers=1, batch_size, hidden_size)
    """
    assert out_size == prepped["out_size"]
    assert hidden.shape[0] == 1, "only n_layers=1 (module default) implemented"
    x = jnp.reshape(word_inputs, (batch_size, -1, hidden_size))
    out, hn = gru_head_batched(x, hidden[0], prepped)
    # For a single-layer GRU, output[:, -1, :] == Linear(h_T).
    return out, hn[None, :, :]


def _jax_reference_single(x_seq, h0_row, params):
    """Pure-f32 reference of torch.nn.GRU cell chain + Linear on one sequence."""
    H = h0_row.shape[0]
    w_ih, w_hh, b_ih, b_hh, w_out, b_out = params
    h = h0_row[None, :].astype(jnp.float32)           # (1, H)
    for t in range(x_seq.shape[0]):
        x_t = x_seq[t:t + 1].astype(jnp.float32)      # (1, H)
        gi = x_t @ w_ih.T + b_ih
        gh = h @ w_hh.T + b_hh
        r = jax.nn.sigmoid(gi[:, 0:H] + gh[:, 0:H])
        z = jax.nn.sigmoid(gi[:, H:2 * H] + gh[:, H:2 * H])
        n = jnp.tanh(gi[:, 2 * H:3 * H] + r * gh[:, 2 * H:3 * H])
        h = (1.0 - z) * n + z * h
    out = h @ w_out.T + b_out
    return out[0], h[0]


if __name__ == "__main__":
    hidden_size = 32
    out_size = 4
    seq_len = 8
    n_layers = 1

    key = jax.random.PRNGKey(0)
    k = jax.random.split(key, 10)
    bound = 1.0 / jnp.sqrt(hidden_size)

    # Deterministic synthetic parameters (torch.nn.GRU / Linear shapes).
    w_ih = jax.random.uniform(k[0], (3 * hidden_size, hidden_size),
                              jnp.float32, -bound, bound)
    w_hh = jax.random.uniform(k[1], (3 * hidden_size, hidden_size),
                              jnp.float32, -bound, bound)
    b_ih = jax.random.uniform(k[2], (3 * hidden_size,), jnp.float32, -bound, bound)
    b_hh = jax.random.uniform(k[3], (3 * hidden_size,), jnp.float32, -bound, bound)
    w_out = jax.random.uniform(k[4], (out_size, hidden_size),
                               jnp.float32, -bound, bound)
    b_out = jax.random.uniform(k[5], (out_size,), jnp.float32, -bound, bound)
    params = (w_ih, w_hh, b_ih, b_hh, w_out, b_out)

    # One-time weight layout conversion (not per forward call).
    prepped = prepare_params(params, hidden_size=hidden_size, out_size=out_size)

    # bf16 weights (f32 accumulation + f32 gate math) -> loosened tolerance.
    tol = dict(atol=3e-2, rtol=3e-2)

    # --- 1) Module-parity check: batch_size=1, hidden = init_hidden() -------
    word_inputs = jax.random.normal(k[6], (seq_len, hidden_size), jnp.float32)
    hidden0 = jnp.zeros((n_layers, 1, hidden_size), jnp.float32)
    out, hn = analy_with_gru_forward(word_inputs, hidden0, prepped,
                                     hidden_size=hidden_size,
                                     out_size=out_size, batch_size=1)
    out = jax.block_until_ready(out)
    hn = jax.block_until_ready(hn)
    assert out.shape == (1, out_size) and hn.shape == (n_layers, 1, hidden_size)
    ref_out, ref_h = _jax_reference_single(
        word_inputs, jnp.zeros((hidden_size,), jnp.float32), params)
    assert jnp.allclose(out[0], ref_out, **tol), (out[0], ref_out)
    assert jnp.allclose(hn[0, 0], ref_h, **tol)

    # --- 2) Batched path (biggest perf lever): 8 sequences, one call --------
    B = 8
    xb = jax.random.normal(k[7], (B, seq_len, hidden_size), jnp.float32)
    h0b = 0.1 * jax.random.normal(k[8], (B, hidden_size), jnp.float32)
    out_b, hn_b = gru_head_batched(xb, h0b, prepped)
    out_b = jax.block_until_ready(out_b)
    hn_b = jax.block_until_ready(hn_b)
    assert out_b.shape == (B, out_size) and hn_b.shape == (B, hidden_size)
    ref_ob, ref_hb = jax.vmap(
        lambda xs, h0: _jax_reference_single(xs, h0, params))(xb, h0b)
    assert jnp.allclose(out_b, ref_ob, **tol), (out_b, ref_ob)
    assert jnp.allclose(hn_b, ref_hb, **tol)

    # --- 3) Multi-block grid ("parallel" axis + batch padding 40 -> 48) -----
    B2, blk = 40, 16
    xb2 = jax.random.normal(k[9], (B2, seq_len, hidden_size), jnp.float32)
    h0b2 = jnp.zeros((B2, hidden_size), jnp.float32)
    out_b2, hn_b2 = gru_head_batched(xb2, h0b2, prepped, block_batch=blk)
    out_b2 = jax.block_until_ready(out_b2)
    hn_b2 = jax.block_until_ready(hn_b2)
    ref_ob2, ref_hb2 = jax.vmap(
        lambda xs, h0: _jax_reference_single(xs, h0, params))(xb2, h0b2)
    assert jnp.allclose(out_b2, ref_ob2, **tol)
    assert jnp.allclose(hn_b2, ref_hb2, **tol)

    print("KERNEL_OK")
</pallas_src>

<mosaic_0001>
module attributes {stable_mosaic.version = 11 : i64} {
  func.func @_gru_head_kernel(%arg0: i32, %arg1: memref<64x32xf32, #tpu.memory_space<vmem>>, %arg2: memref<8x32xf32, #tpu.memory_space<vmem>>, %arg3: memref<32x384xbf16, #tpu.memory_space<vmem>>, %arg4: memref<1x384xf32, #tpu.memory_space<vmem>>, %arg5: memref<32x384xbf16, #tpu.memory_space<vmem>>, %arg6: memref<1x32xf32, #tpu.memory_space<vmem>>, %arg7: memref<32x128xbf16, #tpu.memory_space<vmem>>, %arg8: memref<1x128xf32, #tpu.memory_space<vmem>>, %arg9: memref<8x128xf32, #tpu.memory_space<vmem>>, %arg10: memref<8x128xf32, #tpu.memory_space<vmem>>) attributes {dimension_semantics = [#tpu.dimension_semantics<parallel>], iteration_bounds = array<i64: 1>, scalar_prefetch = 0 : i64, scratch_operands = 0 : i64, tpu.core_type = #tpu.core_type<tc>, window_params = [{transform_indices = @transform_0, window_bounds = array<i64: 64, 32>}, {transform_indices = @transform_1, window_bounds = array<i64: 8, 32>}, {pipeline_mode = #tpu.pipeline_mode<synchronous>, transform_indices = @transform_2, window_bounds = array<i64: 32, 384>}, {pipeline_mode = #tpu.pipeline_mode<synchronous>, transform_indices = @transform_3, window_bounds = array<i64: 1, 384>}, {pipeline_mode = #tpu.pipeline_mode<synchronous>, transform_indices = @transform_4, window_bounds = array<i64: 32, 384>}, {pipeline_mode = #tpu.pipeline_mode<synchronous>, transform_indices = @transform_5, window_bounds = array<i64: 1, 32>}, {pipeline_mode = #tpu.pipeline_mode<synchronous>, transform_indices = @transform_6, window_bounds = array<i64: 32, 128>}, {pipeline_mode = #tpu.pipeline_mode<synchronous>, transform_indices = @transform_7, window_bounds = array<i64: 1, 128>}, {transform_indices = @transform_8, window_bounds = array<i64: 8, 128>}, {transform_indices = @transform_9, window_bounds = array<i64: 8, 128>}]} {
    %c0 = arith.constant 0 : index
    %c0_0 = arith.constant 0 : index
    %0 = vector.load %arg1[%c0, %c0_0] : memref<64x32xf32, #tpu.memory_space<vmem>>, vector<64x32xf32>
    %1 = arith.truncf %0 : vector<64x32xf32> to vector<64x32xbf16>
    %c0_1 = arith.constant 0 : index
    %c0_2 = arith.constant 0 : index
    %2 = vector.load %arg3[%c0_1, %c0_2] : memref<32x384xbf16, #tpu.memory_space<vmem>>, vector<32x384xbf16>
    %cst = arith.constant dense<0.000000e+00> : vector<64x384xf32>
    %3 = tpu.matmul %1, %2, %cst {dimension_numbers = #tpu.dot_dimension_numbers<[1], [0], [0], [1], [0, 0, 1, 1], [], []>} : vector<64x32xbf16>, vector<32x384xbf16>, vector<64x384xf32> -> vector<64x384xf32>
    %c0_3 = arith.constant 0 : index
    %c0_4 = arith.constant 0 : index
    %4 = vector.load %arg4[%c0_3, %c0_4] : memref<1x384xf32, #tpu.memory_space<vmem>>, vector<1x384xf32>
    %5 = vector.broadcast %4 : vector<1x384xf32> to vector<64x384xf32>
    %6 = arith.addf %3, %5 : vector<64x384xf32>
    %7 = vector.extract_strided_slice %6 {offsets = [0, 0], sizes = [8, 32], strides = [1, 1]} : vector<64x384xf32> to vector<8x32xf32>
    %8 = vector.extract_strided_slice %6 {offsets = [8, 0], sizes = [8, 32], strides = [1, 1]} : vector<64x384xf32> to vector<8x32xf32>
    %9 = vector.extract_strided_slice %6 {offsets = [16, 0], sizes = [8, 32], strides = [1, 1]} : vector<64x384xf32> to vector<8x32xf32>
    %10 = vector.extract_strided_slice %6 {offsets = [24, 0], sizes = [8, 32], strides = [1, 1]} : vector<64x384xf32> to vector<8x32xf32>
    %11 = vector.extract_strided_slice %6 {offsets = [32, 0], sizes = [8, 32], strides = [1, 1]} : vector<64x384xf32> to vector<8x32xf32>
    %12 = vector.extract_strided_slice %6 {offsets = [40, 0], sizes = [8, 32], strides = [1, 1]} : vector<64x384xf32> to vector<8x32xf32>
    %13 = vector.extract_strided_slice %6 {offsets = [48, 0], sizes = [8, 32], strides = [1, 1]} : vector<64x384xf32> to vector<8x32xf32>
    %14 = vector.extract_strided_slice %6 {offsets = [56, 0], sizes = [8, 32], strides = [1, 1]} : vector<64x384xf32> to vector<8x32xf32>
    %15 = vector.extract_strided_slice %6 {offsets = [0, 128], sizes = [8, 32], strides = [1, 1]} : vector<64x384xf32> to vector<8x32xf32>
    %16 = vector.extract_strided_slice %6 {offsets = [8, 128], sizes = [8, 32], strides = [1, 1]} : vector<64x384xf32> to vector<8x32xf32>
    %17 = vector.extract_strided_slice %6 {offsets = [16, 128], sizes = [8, 32], strides = [1, 1]} : vector<64x384xf32> to vector<8x32xf32>
    %18 = vector.extract_strided_slice %6 {offsets = [24, 128], sizes = [8, 32], strides = [1, 1]} : vector<64x384xf32> to vector<8x32xf32>
    %19 = vector.extract_strided_slice %6 {offsets = [32, 128], sizes = [8, 32], strides = [1, 1]} : vector<64x384xf32> to vector<8x32xf32>
    %20 = vector.extract_strided_slice %6 {offsets = [40, 128], sizes = [8, 32], strides = [1, 1]} : vector<64x384xf32> to vector<8x32xf32>
    %21 = vector.extract_strided_slice %6 {offsets = [48, 128], sizes = [8, 32], strides = [1, 1]} : vector<64x384xf32> to vector<8x32xf32>
    %22 = vector.extract_strided_slice %6 {offsets = [56, 128], sizes = [8, 32], strides = [1, 1]} : vector<64x384xf32> to vector<8x32xf32>
    %23 = vector.extract_strided_slice %6 {offsets = [0, 256], sizes = [8, 32], strides = [1, 1]} : vector<64x384xf32> to vector<8x32xf32>
    %24 = vector.extract_strided_slice %6 {offsets = [8, 256], sizes = [8, 32], strides = [1, 1]} : vector<64x384xf32> to vector<8x32xf32>
    %25 = vector.extract_strided_slice %6 {offsets = [16, 256], sizes = [8, 32], strides = [1, 1]} : vector<64x384xf32> to vector<8x32xf32>
    %26 = vector.extract_strided_slice %6 {offsets = [24, 256], sizes = [8, 32], strides = [1, 1]} : vector<64x384xf32> to vector<8x32xf32>
    %27 = vector.extract_strided_slice %6 {offsets = [32, 256], sizes = [8, 32], strides = [1, 1]} : vector<64x384xf32> to vector<8x32xf32>
    %28 = vector.extract_strided_slice %6 {offsets = [40, 256], sizes = [8, 32], strides = [1, 1]} : vector<64x384xf32> to vector<8x32xf32>
    %29 = vector.extract_strided_slice %6 {offsets = [48, 256], sizes = [8, 32], strides = [1, 1]} : vector<64x384xf32> to vector<8x32xf32>
    %30 = vector.extract_strided_slice %6 {offsets = [56, 256], sizes = [8, 32], strides = [1, 1]} : vector<64x384xf32> to vector<8x32xf32>
    %c0_5 = arith.constant 0 : index
    %c0_6 = arith.constant 0 : index
    %31 = vector.load %arg6[%c0_5, %c0_6] : memref<1x32xf32, #tpu.memory_space<vmem>>, vector<1x32xf32>
    %32 = vector.shape_cast %31 : vector<1x32xf32> to vector<1x32xf32>
    %33 = vector.broadcast %32 : vector<1x32xf32> to vector<8x32xf32>
    %c0_7 = arith.constant 0 : index
    %c0_8 = arith.constant 0 : index
    %34 = vector.load %arg2[%c0_7, %c0_8] : memref<8x32xf32, #tpu.memory_space<vmem>>, vector<8x32xf32>
    %35 = arith.truncf %34 : vector<8x32xf32> to vector<8x32xbf16>
    %c0_9 = arith.constant 0 : index
    %c0_10 = arith.constant 0 : index
    %36 = vector.load %arg5[%c0_9, %c0_10] : memref<32x384xbf16, #tpu.memory_space<vmem>>, vector<32x384xbf16>
    %cst_11 = arith.constant dense<0.000000e+00> : vector<8x384xf32>
    %37 = tpu.matmul %35, %36, %cst_11 {dimension_numbers = #tpu.dot_dimension_numbers<[1], [0], [0], [1], [0, 0, 1, 1], [], []>} : vector<8x32xbf16>, vector<32x384xbf16>, vector<8x384xf32> -> vector<8x384xf32>
    %38 = vector.extract_strided_slice %37 {offsets = [0, 0], sizes = [8, 32], strides = [1, 1]} : vector<8x384xf32> to vector<8x32xf32>
    %39 = arith.addf %7, %38 : vector<8x32xf32>
    %cst_12 = arith.constant 5.000000e-01 : f32
    %40 = vector.broadcast %cst_12 : f32 to vector<8x32xf32>
    %41 = arith.mulf %40, %39 : vector<8x32xf32>
    %42 = math.tanh %41 : vector<8x32xf32>
    %cst_13 = arith.constant 5.000000e-01 : f32
    %43 = vector.broadcast %cst_13 : f32 to vector<8x32xf32>
    %44 = arith.mulf %43, %42 : vector<8x32xf32>
    %cst_14 = arith.constant 5.000000e-01 : f32
    %45 = vector.broadcast %cst_14 : f32 to vector<8x32xf32>
    %46 = arith.addf %44, %45 : vector<8x32xf32>
    %47 = vector.extract_strided_slice %37 {offsets = [0, 128], sizes = [8, 32], strides = [1, 1]} : vector<8x384xf32> to vector<8x32xf32>
    %48 = arith.addf %15, %47 : vector<8x32xf32>
    %cst_15 = arith.constant 5.000000e-01 : f32
    %49 = vector.broadcast %cst_15 : f32 to vector<8x32xf32>
    %50 = arith.mulf %49, %48 : vector<8x32xf32>
    %51 = math.tanh %50 : vector<8x32xf32>
    %cst_16 = arith.constant 5.000000e-01 : f32
    %52 = vector.broadcast %cst_16 : f32 to vector<8x32xf32>
    %53 = arith.mulf %52, %51 : vector<8x32xf32>
    %cst_17 = arith.constant 5.000000e-01 : f32
    %54 = vector.broadcast %cst_17 : f32 to vector<8x32xf32>
    %55 = arith.addf %53, %54 : vector<8x32xf32>
    %56 = vector.extract_strided_slice %37 {offsets = [0, 256], sizes = [8, 32], strides = [1, 1]} : vector<8x384xf32> to vector<8x32xf32>
    %57 = arith.addf %56, %33 : vector<8x32xf32>
    %58 = arith.mulf %46, %57 : vector<8x32xf32>
    %59 = arith.addf %23, %58 : vector<8x32xf32>
    %60 = math.tanh %59 : vector<8x32xf32>
    %61 = arith.subf %34, %60 : vector<8x32xf32>
    %62 = arith.mulf %55, %61 : vector<8x32xf32>
    %63 = arith.addf %60, %62 : vector<8x32xf32>
    %64 = arith.truncf %63 : vector<8x32xf32> to vector<8x32xbf16>
    %c0_18 = arith.constant 0 : index
    %c0_19 = arith.constant 0 : index
    %65 = vector.load %arg5[%c0_18, %c0_19] : memref<32x384xbf16, #tpu.memory_space<vmem>>, vector<32x384xbf16>
    %cst_20 = arith.constant dense<0.000000e+00> : vector<8x384xf32>
    %66 = tpu.matmul %64, %65, %cst_20 {dimension_numbers = #tpu.dot_dimension_numbers<[1], [0], [0], [1], [0, 0, 1, 1], [], []>} : vector<8x32xbf16>, vector<32x384xbf16>, vector<8x384xf32> -> vector<8x384xf32>
    %67 = vector.extract_strided_slice %66 {offsets = [0, 0], sizes = [8, 32], strides = [1, 1]} : vector<8x384xf32> to vector<8x32xf32>
    %68 = arith.addf %8, %67 : vector<8x32xf32>
    %cst_21 = arith.constant 5.000000e-01 : f32
    %69 = vector.broadcast %cst_21 : f32 to vector<8x32xf32>
    %70 = arith.mulf %69, %68 : vector<8x32xf32>
    %71 = math.tanh %70 : vector<8x32xf32>
    %cst_22 = arith.constant 5.000000e-01 : f32
    %72 = vector.broadcast %cst_22 : f32 to vector<8x32xf32>
    %73 = arith.mulf %72, %71 : vector<8x32xf32>
    %cst_23 = arith.constant 5.000000e-01 : f32
    %74 = vector.broadcast %cst_23 : f32 to vector<8x32xf32>
    %75 = arith.addf %73, %74 : vector<8x32xf32>
    %76 = vector.extract_strided_slice %66 {offsets = [0, 128], sizes = [8, 32], strides = [1, 1]} : vector<8x384xf32> to vector<8x32xf32>
    %77 = arith.addf %16, %76 : vector<8x32xf32>
    %cst_24 = arith.constant 5.000000e-01 : f32
    %78 = vector.broadcast %cst_24 : f32 to vector<8x32xf32>
    %79 = arith.mulf %78, %77 : vector<8x32xf32>
    %80 = math.tanh %79 : vector<8x32xf32>
    %cst_25 = arith.constant 5.000000e-01 : f32
    %81 = vector.broadcast %cst_25 : f32 to vector<8x32xf32>
    %82 = arith.mulf %81, %80 : vector<8x32xf32>
    %cst_26 = arith.constant 5.000000e-01 : f32
    %83 = vector.broadcast %cst_26 : f32 to vector<8x32xf32>
    %84 = arith.addf %82, %83 : vector<8x32xf32>
    %85 = vector.extract_strided_slice %66 {offsets = [0, 256], sizes = [8, 32], strides = [1, 1]} : vector<8x384xf32> to vector<8x32xf32>
    %86 = arith.addf %85, %33 : vector<8x32xf32>
    %87 = arith.mulf %75, %86 : vector<8x32xf32>
    %88 = arith.addf %24, %87 : vector<8x32xf32>
    %89 = math.tanh %88 : vector<8x32xf32>
    %90 = arith.subf %63, %89 : vector<8x32xf32>
    %91 = arith.mulf %84, %90 : vector<8x32xf32>
    %92 = arith.addf %89, %91 : vector<8x32xf32>
    %93 = arith.truncf %92 : vector<8x32xf32> to vector<8x32xbf16>
    %c0_27 = arith.constant 0 : index
    %c0_28 = arith.constant 0 : index
    %94 = vector.load %arg5[%c0_27, %c0_28] : memref<32x384xbf16, #tpu.memory_space<vmem>>, vector<32x384xbf16>
    %cst_29 = arith.constant dense<0.000000e+00> : vector<8x384xf32>
    %95 = tpu.matmul %93, %94, %cst_29 {dimension_numbers = #tpu.dot_dimension_numbers<[1], [0], [0], [1], [0, 0, 1, 1], [], []>} : vector<8x32xbf16>, vector<32x384xbf16>, vector<8x384xf32> -> vector<8x384xf32>
    %96 = vector.extract_strided_slice %95 {offsets = [0, 0], sizes = [8, 32], strides = [1, 1]} : vector<8x384xf32> to vector<8x32xf32>
    %97 = arith.addf %9, %96 : vector<8x32xf32>
    %cst_30 = arith.constant 5.000000e-01 : f32
    %98 = vector.broadcast %cst_30 : f32 to vector<8x32xf32>
    %99 = arith.mulf %98, %97 : vector<8x32xf32>
    %100 = math.tanh %99 : vector<8x32xf32>
    %cst_31 = arith.constant 5.000000e-01 : f32
    %101 = vector.broadcast %cst_31 : f32 to vector<8x32xf32>
    %102 = arith.mulf %101, %100 : vector<8x32xf32>
    %cst_32 = arith.constant 5.000000e-01 : f32
    %103 = vector.broadcast %cst_32 : f32 to vector<8x32xf32>
    %104 = arith.addf %102, %103 : vector<8x32xf32>
    %105 = vector.extract_strided_slice %95 {offsets = [0, 128], sizes = [8, 32], strides = [1, 1]} : vector<8x384xf32> to vector<8x32xf32>
    %106 = arith.addf %17, %105 : vector<8x32xf32>
    %cst_33 = arith.constant 5.000000e-01 : f32
    %107 = vector.broadcast %cst_33 : f32 to vector<8x32xf32>
    %108 = arith.mulf %107, %106 : vector<8x32xf32>
    %109 = math.tanh %108 : vector<8x32xf32>
    %cst_34 = arith.constant 5.000000e-01 : f32
    %110 = vector.broadcast %cst_34 : f32 to vector<8x32xf32>
    %111 = arith.mulf %110, %109 : vector<8x32xf32>
    %cst_35 = arith.constant 5.000000e-01 : f32
    %112 = vector.broadcast %cst_35 : f32 to vector<8x32xf32>
    %113 = arith.addf %111, %112 : vector<8x32xf32>
    %114 = vector.extract_strided_slice %95 {offsets = [0, 256], sizes = [8, 32], strides = [1, 1]} : vector<8x384xf32> to vector<8x32xf32>
    %115 = arith.addf %114, %33 : vector<8x32xf32>
    %116 = arith.mulf %104, %115 : vector<8x32xf32>
    %117 = arith.addf %25, %116 : vector<8x32xf32>
    %118 = math.tanh %117 : vector<8x32xf32>
    %119 = arith.subf %92, %118 : vector<8x32xf32>
    %120 = arith.mulf %113, %119 : vector<8x32xf32>
    %121 = arith.addf %118, %120 : vector<8x32xf32>
    %122 = arith.truncf %121 : vector<8x32xf32> to vector<8x32xbf16>
    %c0_36 = arith.constant 0 : index
    %c0_37 = arith.constant 0 : index
    %123 = vector.load %arg5[%c0_36, %c0_37] : memref<32x384xbf16, #tpu.memory_space<vmem>>, vector<32x384xbf16>
    %cst_38 = arith.constant dense<0.000000e+00> : vector<8x384xf32>
    %124 = tpu.matmul %122, %123, %cst_38 {dimension_numbers = #tpu.dot_dimension_numbers<[1], [0], [0], [1], [0, 0, 1, 1], [], []>} : vector<8x32xbf16>, vector<32x384xbf16>, vector<8x384xf32> -> vector<8x384xf32>
    %125 = vector.extract_strided_slice %124 {offsets = [0, 0], sizes = [8, 32], strides = [1, 1]} : vector<8x384xf32> to vector<8x32xf32>
    %126 = arith.addf %10, %125 : vector<8x32xf32>
    %cst_39 = arith.constant 5.000000e-01 : f32
    %127 = vector.broadcast %cst_39 : f32 to vector<8x32xf32>
    %128 = arith.mulf %127, %126 : vector<8x32xf32>
    %129 = math.tanh %128 : vector<8x32xf32>
    %cst_40 = arith.constant 5.000000e-01 : f32
    %130 = vector.broadcast %cst_40 : f32 to vector<8x32xf32>
    %131 = arith.mulf %130, %129 : vector<8x32xf32>
    %cst_41 = arith.constant 5.000000e-01 : f32
    %132 = vector.broadcast %cst_41 : f32 to vector<8x32xf32>
    %133 = arith.addf %131, %132 : vector<8x32xf32>
    %134 = vector.extract_strided_slice %124 {offsets = [0, 128], sizes = [8, 32], strides = [1, 1]} : vector<8x384xf32> to vector<8x32xf32>
    %135 = arith.addf %18, %134 : vector<8x32xf32>
    %cst_42 = arith.constant 5.000000e-01 : f32
    %136 = vector.broadcast %cst_42 : f32 to vector<8x32xf32>
    %137 = arith.mulf %136, %135 : vector<8x32xf32>
    %138 = math.tanh %137 : vector<8x32xf32>
    %cst_43 = arith.constant 5.000000e-01 : f32
    %139 = vector.broadcast %cst_43 : f32 to vector<8x32xf32>
    %140 = arith.mulf %139, %138 : vector<8x32xf32>
    %cst_44 = arith.constant 5.000000e-01 : f32
    %141 = vector.broadcast %cst_44 : f32 to vector<8x32xf32>
    %142 = arith.addf %140, %141 : vector<8x32xf32>
    %143 = vector.extract_strided_slice %124 {offsets = [0, 256], sizes = [8, 32], strides = [1, 1]} : vector<8x384xf32> to vector<8x32xf32>
    %144 = arith.addf %143, %33 : vector<8x32xf32>
    %145 = arith.mulf %133, %144 : vector<8x32xf32>
    %146 = arith.addf %26, %145 : vector<8x32xf32>
    %147 = math.tanh %146 : vector<8x32xf32>
    %148 = arith.subf %121, %147 : vector<8x32xf32>
    %149 = arith.mulf %142, %148 : vector<8x32xf32>
    %150 = arith.addf %147, %149 : vector<8x32xf32>
    %151 = arith.truncf %150 : vector<8x32xf32> to vector<8x32xbf16>
    %c0_45 = arith.constant 0 : index
    %c0_46 = arith.constant 0 : index
    %152 = vector.load %arg5[%c0_45, %c0_46] : memref<32x384xbf16, #tpu.memory_space<vmem>>, vector<32x384xbf16>
    %cst_47 = arith.constant dense<0.000000e+00> : vector<8x384xf32>
    %153 = tpu.matmul %151, %152, %cst_47 {dimension_numbers = #tpu.dot_dimension_numbers<[1], [0], [0], [1], [0, 0, 1, 1], [], []>} : vector<8x32xbf16>, vector<32x384xbf16>, vector<8x384xf32> -> vector<8x384xf32>
    %154 = vector.extract_strided_slice %153 {offsets = [0, 0], sizes = [8, 32], strides = [1, 1]} : vector<8x384xf32> to vector<8x32xf32>
    %155 = arith.addf %11, %154 : vector<8x32xf32>
    %cst_48 = arith.constant 5.000000e-01 : f32
    %156 = vector.broadcast %cst_48 : f32 to vector<8x32xf32>
    %157 = arith.mulf %156, %155 : vector<8x32xf32>
    %158 = math.tanh %157 : vector<8x32xf32>
    %cst_49 = arith.constant 5.000000e-01 : f32
    %159 = vector.broadcast %cst_49 : f32 to vector<8x32xf32>
    %160 = arith.mulf %159, %158 : vector<8x32xf32>
    %cst_50 = arith.constant 5.000000e-01 : f32
    %161 = vector.broadcast %cst_50 : f32 to vector<8x32xf32>
    %162 = arith.addf %160, %161 : vector<8x32xf32>
    %163 = vector.extract_strided_slice %153 {offsets = [0, 128], sizes = [8, 32], strides = [1, 1]} : vector<8x384xf32> to vector<8x32xf32>
    %164 = arith.addf %19, %163 : vector<8x32xf32>
    %cst_51 = arith.constant 5.000000e-01 : f32
    %165 = vector.broadcast %cst_51 : f32 to vector<8x32xf32>
    %166 = arith.mulf %165, %164 : vector<8x32xf32>
    %167 = math.tanh %166 : vector<8x32xf32>
    %cst_52 = arith.constant 5.000000e-01 : f32
    %168 = vector.broadcast %cst_52 : f32 to vector<8x32xf32>
    %169 = arith.mulf %168, %167 : vector<8x32xf32>
    %cst_53 = arith.constant 5.000000e-01 : f32
    %170 = vector.broadcast %cst_53 : f32 to vector<8x32xf32>
    %171 = arith.addf %169, %170 : vector<8x32xf32>
    %172 = vector.extract_strided_slice %153 {offsets = [0, 256], sizes = [8, 32], strides = [1, 1]} : vector<8x384xf32> to vector<8x32xf32>
    %173 = arith.addf %172, %33 : vector<8x32xf32>
    %174 = arith.mulf %162, %173 : vector<8x32xf32>
    %175 = arith.addf %27, %174 : vector<8x32xf32>
    %176 = math.tanh %175 : vector<8x32xf32>
    %177 = arith.subf %150, %176 : vector<8x32xf32>
    %178 = arith.mulf %171, %177 : vector<8x32xf32>
    %179 = arith.addf %176, %178 : vector<8x32xf32>
    %180 = arith.truncf %179 : vector<8x32xf32> to vector<8x32xbf16>
    %c0_54 = arith.constant 0 : index
    %c0_55 = arith.constant 0 : index
    %181 = vector.load %arg5[%c0_54, %c0_55] : memref<32x384xbf16, #tpu.memory_space<vmem>>, vector<32x384xbf16>
    %cst_56 = arith.constant dense<0.000000e+00> : vector<8x384xf32>
    %182 = tpu.matmul %180, %181, %cst_56 {dimension_numbers = #tpu.dot_dimension_numbers<[1], [0], [0], [1], [0, 0, 1, 1], [], []>} : vector<8x32xbf16>, vector<32x384xbf16>, vector<8x384xf32> -> vector<8x384xf32>
    %183 = vector.extract_strided_slice %182 {offsets = [0, 0], sizes = [8, 32], strides = [1, 1]} : vector<8x384xf32> to vector<8x32xf32>
    %184 = arith.addf %12, %183 : vector<8x32xf32>
    %cst_57 = arith.constant 5.000000e-01 : f32
    %185 = vector.broadcast %cst_57 : f32 to vector<8x32xf32>
    %186 = arith.mulf %185, %184 : vector<8x32xf32>
    %187 = math.tanh %186 : vector<8x32xf32>
    %cst_58 = arith.constant 5.000000e-01 : f32
    %188 = vector.broadcast %cst_58 : f32 to vector<8x32xf32>
    %189 = arith.mulf %188, %187 : vector<8x32xf32>
    %cst_59 = arith.constant 5.000000e-01 : f32
    %190 = vector.broadcast %cst_59 : f32 to vector<8x32xf32>
    %191 = arith.addf %189, %190 : vector<8x32xf32>
    %192 = vector.extract_strided_slice %182 {offsets = [0, 128], sizes = [8, 32], strides = [1, 1]} : vector<8x384xf32> to vector<8x32xf32>
    %193 = arith.addf %20, %192 : vector<8x32xf32>
    %cst_60 = arith.constant 5.000000e-01 : f32
    %194 = vector.broadcast %cst_60 : f32 to vector<8x32xf32>
    %195 = arith.mulf %194, %193 : vector<8x32xf32>
    %196 = math.tanh %195 : vector<8x32xf32>
    %cst_61 = arith.constant 5.000000e-01 : f32
    %197 = vector.broadcast %cst_61 : f32 to vector<8x32xf32>
    %198 = arith.mulf %197, %196 : vector<8x32xf32>
    %cst_62 = arith.constant 5.000000e-01 : f32
    %199 = vector.broadcast %cst_62 : f32 to vector<8x32xf32>
    %200 = arith.addf %198, %199 : vector<8x32xf32>
    %201 = vector.extract_strided_slice %182 {offsets = [0, 256], sizes = [8, 32], strides = [1, 1]} : vector<8x384xf32> to vector<8x32xf32>
    %202 = arith.addf %201, %33 : vector<8x32xf32>
    %203 = arith.mulf %191, %202 : vector<8x32xf32>
    %204 = arith.addf %28, %203 : vector<8x32xf32>
    %205 = math.tanh %204 : vector<8x32xf32>
    %206 = arith.subf %179, %205 : vector<8x32xf32>
    %207 = arith.mulf %200, %206 : vector<8x32xf32>
    %208 = arith.addf %205, %207 : vector<8x32xf32>
    %209 = arith.truncf %208 : vector<8x32xf32> to vector<8x32xbf16>
    %c0_63 = arith.constant 0 : index
    %c0_64 = arith.constant 0 : index
    %210 = vector.load %arg5[%c0_63, %c0_64] : memref<32x384xbf16, #tpu.memory_space<vmem>>, vector<32x384xbf16>
    %cst_65 = arith.constant dense<0.000000e+00> : vector<8x384xf32>
    %211 = tpu.matmul %209, %210, %cst_65 {dimension_numbers = #tpu.dot_dimension_numbers<[1], [0], [0], [1], [0, 0, 1, 1], [], []>} : vector<8x32xbf16>, vector<32x384xbf16>, vector<8x384xf32> -> vector<8x384xf32>
    %212 = vector.extract_strided_slice %211 {offsets = [0, 0], sizes = [8, 32], strides = [1, 1]} : vector<8x384xf32> to vector<8x32xf32>
    %213 = arith.addf %13, %212 : vector<8x32xf32>
    %cst_66 = arith.constant 5.000000e-01 : f32
    %214 = vector.broadcast %cst_66 : f32 to vector<8x32xf32>
    %215 = arith.mulf %214, %213 : vector<8x32xf32>
    %216 = math.tanh %215 : vector<8x32xf32>
    %cst_67 = arith.constant 5.000000e-01 : f32
    %217 = vector.broadcast %cst_67 : f32 to vector<8x32xf32>
    %218 = arith.mulf %217, %216 : vector<8x32xf32>
    %cst_68 = arith.constant 5.000000e-01 : f32
    %219 = vector.broadcast %cst_68 : f32 to vector<8x32xf32>
    %220 = arith.addf %218, %219 : vector<8x32xf32>
    %221 = vector.extract_strided_slice %211 {offsets = [0, 128], sizes = [8, 32], strides = [1, 1]} : vector<8x384xf32> to vector<8x32xf32>
    %222 = arith.addf %21, %221 : vector<8x32xf32>
    %cst_69 = arith.constant 5.000000e-01 : f32
    %223 = vector.broadcast %cst_69 : f32 to vector<8x32xf32>
    %224 = arith.mulf %223, %222 : vector<8x32xf32>
    %225 = math.tanh %224 : vector<8x32xf32>
    %cst_70 = arith.constant 5.000000e-01 : f32
    %226 = vector.broadcast %cst_70 : f32 to vector<8x32xf32>
    %227 = arith.mulf %226, %225 : vector<8x32xf32>
    %cst_71 = arith.constant 5.000000e-01 : f32
    %228 = vector.broadcast %cst_71 : f32 to vector<8x32xf32>
    %229 = arith.addf %227, %228 : vector<8x32xf32>
    %230 = vector.extract_strided_slice %211 {offsets = [0, 256], sizes = [8, 32], strides = [1, 1]} : vector<8x384xf32> to vector<8x32xf32>
    %231 = arith.addf %230, %33 : vector<8x32xf32>
    %232 = arith.mulf %220, %231 : vector<8x32xf32>
    %233 = arith.addf %29, %232 : vector<8x32xf32>
    %234 = math.tanh %233 : vector<8x32xf32>
    %235 = arith.subf %208, %234 : vector<8x32xf32>
    %236 = arith.mulf %229, %235 : vector<8x32xf32>
    %237 = arith.addf %234, %236 : vector<8x32xf32>
    %238 = arith.truncf %237 : vector<8x32xf32> to vector<8x32xbf16>
    %c0_72 = arith.constant 0 : index
    %c0_73 = arith.constant 0 : index
    %239 = vector.load %arg5[%c0_72, %c0_73] : memref<32x384xbf16, #tpu.memory_space<vmem>>, vector<32x384xbf16>
    %cst_74 = arith.constant dense<0.000000e+00> : vector<8x384xf32>
    %240 = tpu.matmul %238, %239, %cst_74 {dimension_numbers = #tpu.dot_dimension_numbers<[1], [0], [0], [1], [0, 0, 1, 1], [], []>} : vector<8x32xbf16>, vector<32x384xbf16>, vector<8x384xf32> -> vector<8x384xf32>
    %241 = vector.extract_strided_slice %240 {offsets = [0, 0], sizes = [8, 32], strides = [1, 1]} : vector<8x384xf32> to vector<8x32xf32>
    %242 = arith.addf %14, %241 : vector<8x32xf32>
    %cst_75 = arith.constant 5.000000e-01 : f32
    %243 = vector.broadcast %cst_75 : f32 to vector<8x32xf32>
    %244 = arith.mulf %243, %242 : vector<8x32xf32>
    %245 = math.tanh %244 : vector<8x32xf32>
    %cst_76 = arith.constant 5.000000e-01 : f32
    %246 = vector.broadcast %cst_76 : f32 to vector<8x32xf32>
    %247 = arith.mulf %246, %245 : vector<8x32xf32>
    %cst_77 = arith.constant 5.000000e-01 : f32
    %248 = vector.broadcast %cst_77 : f32 to vector<8x32xf32>
    %249 = arith.addf %247, %248 : vector<8x32xf32>
    %250 = vector.extract_strided_slice %240 {offsets = [0, 128], sizes = [8, 32], strides = [1, 1]} : vector<8x384xf32> to vector<8x32xf32>
    %251 = arith.addf %22, %250 : vector<8x32xf32>
    %cst_78 = arith.constant 5.000000e-01 : f32
    %252 = vector.broadcast %cst_78 : f32 to vector<8x32xf32>
    %253 = arith.mulf %252, %251 : vector<8x32xf32>
    %254 = math.tanh %253 : vector<8x32xf32>
    %cst_79 = arith.constant 5.000000e-01 : f32
    %255 = vector.broadcast %cst_79 : f32 to vector<8x32xf32>
    %256 = arith.mulf %255, %254 : vector<8x32xf32>
    %cst_80 = arith.constant 5.000000e-01 : f32
    %257 = vector.broadcast %cst_80 : f32 to vector<8x32xf32>
    %258 = arith.addf %256, %257 : vector<8x32xf32>
    %259 = vector.extract_strided_slice %240 {offsets = [0, 256], sizes = [8, 32], strides = [1, 1]} : vector<8x384xf32> to vector<8x32xf32>
    %260 = arith.addf %259, %33 : vector<8x32xf32>
    %261 = arith.mulf %249, %260 : vector<8x32xf32>
    %262 = arith.addf %30, %261 : vector<8x32xf32>
    %263 = math.tanh %262 : vector<8x32xf32>
    %264 = arith.subf %237, %263 : vector<8x32xf32>
    %265 = arith.mulf %258, %264 : vector<8x32xf32>
    %266 = arith.addf %263, %265 : vector<8x32xf32>
    %cst_81 = arith.constant 0.000000e+00 : f32
    %267 = vector.broadcast %cst_81 : f32 to vector<8x96xf32>
    %268 = tpu.concatenate %266, %267 in 1 : vector<8x32xf32>, vector<8x96xf32> -> vector<8x128xf32>
    %c0_82 = arith.constant 0 : index
    %c0_83 = arith.constant 0 : index
    %269 = vector.load %arg10[%c0_82, %c0_83] : memref<8x128xf32, #tpu.memory_space<vmem>>, vector<8x128xf32>
    tpu.vector_store %arg10[%c0_82, %c0_83], %268 {strides = array<i32>} : memref<8x128xf32, #tpu.memory_space<vmem>>, vector<8x128xf32>,
    %270 = arith.truncf %266 : vector<8x32xf32> to vector<8x32xbf16>
    %c0_84 = arith.constant 0 : index
    %c0_85 = arith.constant 0 : index
    %271 = vector.load %arg7[%c0_84, %c0_85] : memref<32x128xbf16, #tpu.memory_space<vmem>>, vector<32x128xbf16>
    %cst_86 = arith.constant dense<0.000000e+00> : vector<8x128xf32>
    %272 = tpu.matmul %270, %271, %cst_86 {dimension_numbers = #tpu.dot_dimension_numbers<[1], [0], [0], [1], [0, 0, 1, 1], [], []>} : vector<8x32xbf16>, vector<32x128xbf16>, vector<8x128xf32> -> vector<8x128xf32>
    %c0_87 = arith.constant 0 : index
    %c0_88 = arith.constant 0 : index
    %273 = vector.load %arg8[%c0_87, %c0_88] : memref<1x128xf32, #tpu.memory_space<vmem>>, vector<1x128xf32>
    %274 = vector.broadcast %273 : vector<1x128xf32> to vector<8x128xf32>
    %275 = arith.addf %272, %274 : vector<8x128xf32>
    %c0_89 = arith.constant 0 : index
    %c0_90 = arith.constant 0 : index
    %276 = vector.load %arg9[%c0_89, %c0_90] : memref<8x128xf32, #tpu.memory_space<vmem>>, vector<8x128xf32>
    tpu.vector_store %arg9[%c0_89, %c0_90], %275 {strides = array<i32>} : memref<8x128xf32, #tpu.memory_space<vmem>>, vector<8x128xf32>,
    return
  }
  func.func @transform_0(%arg0: i32) -> (i32, i32) {
    %c0_i32 = arith.constant 0 : i32
    %c0_i32_0 = arith.constant 0 : i32
    return %arg0, %c0_i32 : i32, i32
  }
  func.func @transform_1(%arg0: i32) -> (i32, i32) {
    %c0_i32 = arith.constant 0 : i32
    %c0_i32_0 = arith.constant 0 : i32
    return %arg0, %c0_i32 : i32, i32
  }
  func.func @transform_2(%arg0: i32) -> (i32, i32) {
    %c0_i32 = arith.constant 0 : i32
    %c0_i32_0 = arith.constant 0 : i32
    %c0_i32_1 = arith.constant 0 : i32
    return %c0_i32, %c0_i32_0 : i32, i32
  }
  func.func @transform_3(%arg0: i32) -> (i32, i32) {
    %c0_i32 = arith.constant 0 : i32
    %c0_i32_0 = arith.constant 0 : i32
    %c0_i32_1 = arith.constant 0 : i32
    return %c0_i32, %c0_i32_0 : i32, i32
  }
  func.func @transform_4(%arg0: i32) -> (i32, i32) {
    %c0_i32 = arith.constant 0 : i32
    %c0_i32_0 = arith.constant 0 : i32
    %c0_i32_1 = arith.constant 0 : i32
    return %c0_i32, %c0_i32_0 : i32, i32
  }
  func.func @transform_5(%arg0: i32) -> (i32, i32) {
    %c0_i32 = arith.constant 0 : i32
    %c0_i32_0 = arith.constant 0 : i32
    %c0_i32_1 = arith.constant 0 : i32
    return %c0_i32, %c0_i32_0 : i32, i32
  }
  func.func @transform_6(%arg0: i32) -> (i32, i32) {
    %c0_i32 = arith.constant 0 : i32
    %c0_i32_0 = arith.constant 0 : i32
    %c0_i32_1 = arith.constant 0 : i32
    return %c0_i32, %c0_i32_0 : i32, i32
  }
  func.func @transform_7(%arg0: i32) -> (i32, i32) {
    %c0_i32 = arith.constant 0 : i32
    %c0_i32_0 = arith.constant 0 : i32
    %c0_i32_1 = arith.constant 0 : i32
    return %c0_i32, %c0_i32_0 : i32, i32
  }
  func.func @transform_8(%arg0: i32) -> (i32, i32) {
    %c0_i32 = arith.constant 0 : i32
    %c0_i32_0 = arith.constant 0 : i32
    return %arg0, %c0_i32 : i32, i32
  }
  func.func @transform_9(%arg0: i32) -> (i32, i32) {
    %c0_i32 = arith.constant 0 : i32
    %c0_i32_0 = arith.constant 0 : i32
    return %arg0, %c0_i32 : i32, i32
  }
}

</mosaic_0001>

<bundles_post_ra>
// kernel: tpu_custom_call.1
= control target key start
LH: loop header
LB: loop body
LE: loop exit
PB: predicated region body
PF: predicated region fallthrough
CT: control target
= control target key end

     0   :  { %15 = vsyncpa [#allocation3], 0  ;;  %s1971_s0 = inlined_call_operand.vmem [shape: f32[64,32], index: 0, kind: input, shape index: {}]   ;;  %s1972_s1 = inlined_call_operand.hbm [shape: f32[8,32], index: 1, kind: input, shape index: {}]   ;;  %s1973_s2 = inlined_call_operand.vmem [shape: bf16[32,384], index: 2, kind: input, shape index: {}]   ;;  %s1974_s3 = inlined_call_operand.hbm [shape: f32[1,384], index: 3, kind: input, shape index: {}]   ;;  %s1975_s4 = inlined_call_operand.vmem [shape: bf16[32,384], index: 4, kind: input, shape index: {}]   ;;  %s1976_s5 = inlined_call_operand.vmem [shape: f32[1,32], index: 5, kind: input, shape index: {}]   ;;  %s1977_s6 = inlined_call_operand.vmem [shape: bf16[32,128], index: 6, kind: input, shape index: {}]   ;;  %s1978_s7 = inlined_call_operand.vmem [shape: f32[1,128], index: 7, kind: input, shape index: {}]   ;;  %s1979_s8 = inlined_call_operand.hbm [shape: f32[8,128], index: 8, kind: output, shape index: {0}]   ;;  %s1980_s9 = inlined_call_operand.hbm [shape: f32[8,128], index: 9, kind: output, shape index: {1}]  }
   0x1   :  { %16 = vsyncpa [#allocation6], 0 }
   0x2   :  { %17 = vsyncpa [#allocation4], 0 }
   0x3   :  { %18 = vsyncpa [#allocation9], 0  ;;  %s1569_s30 = smov [#allocation2]   ;;  %s1570_s11 = smov [#allocation5]  }
   0x4   :  { %s27_s10 = sshll.u32 %s1569_s30, 4  ;;  %s39_s12 = sshll.u32 %s1570_s11, 4  ;;  %s28_s10 = int_to_ptr.vmem [resolvable:$true] %s27_s10  ;;  %s40_s12 = int_to_ptr.vmem [resolvable:$true] %s39_s12 }
   0x5   :  { %s1473_s15 = scalar_lea.hbm %s1972_s1, 128 }
   0x6   :  { %p1474_p0 = scmp.ne.s32.totalorder %s1972_s1, %s1473_s15  ;;  %p1477_p1 = scmp.lt.u32.totalorder %s1473_s15, %s1972_s1 }
   0x8   :  { %p1479_p2 = pnand %p1477_p1, %p1474_p0 }
   0xa   :  { %1482 = shalt.err (!%p1479_p2)
}
   0xb   :  { %s1483_s20 = scalar_lea.vmem %s28_s10, 128  ;;  %p1488_p4 = scmp.lt.s32.totalorder %s28_s10, %s28_s10 }
   0xc   :  { %p1484_p3 = scmp.ne.s32.totalorder %s28_s10, %s1483_s20  ;;  %p1489_p5 = scmp.lt.s32.totalorder %s1483_s20, %s1483_s20 }
   0xe   :  { %p1490_p6 = por %p1489_p5, %p1488_p4 }
  0x10   :  { %p1491_p7 = pnand %p1490_p6, %p1484_p3 }
  0x12   :  { %1494 = shalt.err (!%p1491_p7)
}
  0x13   :  { %30 = dma.hbm_to_vmem [thread:$0]  %s1972_s1, 128, %s28_s10, [#allocation3]  }
  0x14   :  { %s1495_s25 = scalar_lea.hbm %s1974_s3, 48 }
  0x15   :  { %p1496_p8 = scmp.ne.s32.totalorder %s1974_s3, %s1495_s25  ;;  %p1499_p9 = scmp.lt.u32.totalorder %s1495_s25, %s1974_s3 }
  0x17   :  { %p1501_p10 = pnand %p1499_p9, %p1496_p8 }
  0x19   :  { %1504 = shalt.err (!%p1501_p10)
}
  0x1a   :  { %s1505_s30 = scalar_lea.vmem %s40_s12, 48  ;;  %s1509_s11 = scalar_lea.vmem %s40_s12, 64 }
  0x1b   :  { %p1506_p11 = scmp.ne.s32.totalorder %s40_s12, %s1505_s30  ;;  %p1510_p12 = scmp.lt.s32.totalorder %s40_s12, %s40_s12 }
  0x1c   :  { %p1511_p13 = scmp.lt.s32.totalorder %s1509_s11, %s1505_s30 }
  0x1e   :  { %p1512_p0 = por %p1511_p13, %p1510_p12 }
  0x20   :  { %p1513_p1 = pnand %p1512_p0, %p1506_p11 }
  0x22   :  { %1516 = shalt.err (!%p1513_p1)
}
  0x23   :  { %42 = dma.hbm_to_vmem [thread:$0]  %s1974_s3, 48, %s40_s12, [#allocation6]  }
  0x24   :  { %1561 = dma.done.wait [#allocation3], 128  }
  0x25   :  { %1562 = vsyncadd [#allocation3], 4294967168 }
  0x26   :  { %1563 = dma.done.wait [#allocation6], 48  }
  0x27   :  { %1564 = vsyncadd [#allocation6], 4294967248  ;;  %v1571_v0 = vmov 0   ;;  %v1407_v1 = vld [vmem:[%s1973_s2 + $0x8] ss:$12 sps:$4 sm:$0xff]   ;;  %v58_v3 = vld [vmem:[%s1971_s0] sm:$0xff]  ;;  %v80_v28 = vlaneseq }
  0x28   :  { %172 = vmatprep.mubr.bf16.mxu0 %v1571_v0  ;;  %v1408_v2 = vld [vmem:[%s1973_s2 + $0x20] ss:$12 sps:$4 sm:$0xff]   ;;  %1316 = vmatprep.subr.bf16.mxu1 %v1407_v1  ;;  %vm127_vm0 = vcmask 261120   ;;  %v60_v5 = vld [vmem:[%s1971_s0 + $0x10] sm:$0xff]  ;;  %v61_v7 = vld [vmem:[%s1971_s0 + $0x18] sm:$0xff]  ;;  %v1572_v23 = vmov 0.0  }
  0x29   :  { %v59_v4 = vld [vmem:[%s1971_s0 + $0x8] sm:$0xff]  ;;  %1317 = vmatpush3.bf16.msra.mxu1 %v1407_v1  ;;  %v1672_v8 = vld [vmem:[%s1975_s4 + $0x4] ss:$12 sps:$4 sm:$0xff]   ;;  %v67_v11 = vpack.c.bf16 %v61_v7, %v60_v5  ;;  %v65_v20 = vld [vmem:[%s1971_s0 + $0x38] sm:$0xff]  ;;  %vm1573_vm1 = vmmov 0   ;;  %v81_v29 = vshrl.u32 %v80_v28, 7 }
  0x2a   :  { %v66_v6 = vpack.c.bf16 %v59_v4, %v58_v3  ;;  %1318 = vmatprep.subr.bf16.mxu1 %v1408_v2  ;;  %v1412_v9 = vld [vmem:[%s1973_s2 + $0x4] ss:$12 sps:$4 sm:$0xff]   ;;  %v1414_v10 = vld [vmem:[%s1973_s2] ss:$12 sps:$4 sm:$0xff]   ;;  %v1415_v16 = vld [vmem:[%s1973_s2 + $0x1c] ss:$12 sps:$4 sm:$0xff]  }
  0x2b   :  { %v62_v12 = vld [vmem:[%s1971_s0 + $0x20] sm:$0xff]  ;;  %v63_v13 = vld [vmem:[%s1971_s0 + $0x28] sm:$0xff]  ;;  %140 = vmatprep.subr.bf16.mxu0 %v1412_v9  ;;  %v64_v17 = vld [vmem:[%s1971_s0 + $0x30] sm:$0xff]  ;;  %v90_v30 = vsub.s32 2, %v81_v29  ;;  %v82_v34 = vsub.s32 0, %v81_v29  ;;  %v86_v37 = vsub.s32 1, %v81_v29 }
  0x2c   :  { %1320 = vmatprep.mubr.msk.bf16.mxu1 %vm127_vm0, %v66_v6  ;;  %v1690_v14 = vld [vmem:[%s1975_s4] ss:$12 sps:$4 sm:$0xff]   ;;  %v68_v15 = vpack.c.bf16 %v63_v13, %v62_v12  ;;  %141 = vmatpush1.bf16.msra.mxu0 %v1414_v10  ;;  %v1702_v18 = vld [vmem:[%s1975_s4 + $0x1c] ss:$12 sps:$4 sm:$0xff]   ;;  %v1419_v19 = vld [vmem:[%s1973_s2 + $0x18] ss:$12 sps:$4 sm:$0xff]   ;;  %v69_v22 = vpack.c.bf16 %v65_v20, %v64_v17 }
  0x2d   :  { %1319 = vmatpush3.bf16.msra.mxu1 %v1408_v2  ;;  %142 = vmatprep.subr.bf16.mxu0 %v1415_v16  ;;  %v1716_v21 = vld [vmem:[%s1975_s4 + $0x18] ss:$12 sps:$4 sm:$0xff]   ;;  %v1737_v26 = vld [vmem:[%s1975_s4 + $0x8] ss:$12 sps:$4 sm:$0xff]   ;;  %v1746_v27 = vld [vmem:[%s1975_s4 + $0x20] ss:$12 sps:$4 sm:$0xff]  }
  0x2e   :  { %330 = vmatprep.subr.bf16.mxu1 %v1672_v8  ;;  %v1728_v24 = vld [vmem:[#allocation2] sm:$0xff]  ;;  %v78_v31 = vld [vmem:[#allocation5] sm:$0x7] }
  0x2f   :  { %v286_v25 = vpack.c.bf16 %v1728_v24, %v1728_v24  ;;  %v1764_v32 = vrot.slane %v78_v31, %v90_v30  ;;  %v83_v42 = vrot.slane %v78_v31, %v82_v34  ;;  %v87_v44 = vrot.slane %v78_v31, %v86_v37 }
  0x30   :  { %1321 = vmatmul.mubr.msk.bf16.vlgmr.msra.gmra.mrb[0].mxu1 %vm127_vm0, %v67_v11  ;;  %143 = vmatpush1.bf16.msra.mxu0 %v1419_v19 }
  0x31   :  { %331 = vmatpush1.bf16.msra.mxu1 %v1690_v14  ;;  %1324 = vmatprep.mubr.msk.bf16.mxu1 %vm127_vm0, %v68_v15 }
  0x32   :  { %332 = vmatprep.subr.bf16.mxu1 %v1702_v18  ;;  %432 = vmatprep.subr.bf16.mxu0 %v1672_v8 }
  0x33   :  { %1248 = vmatmul.mubr.msk.bf16.vlgmr.msra.gmra.mrb[0].mxu0 %vm127_vm0, %v66_v6 }
  0x34   :  { %433 = vmatpush1.bf16.msra.mxu0 %v1690_v14  ;;  %182 = vmatprep.mubr.bf16.mxu0 %v1571_v0 }
  0x35   :  { %333 = vmatpush1.bf16.msra.mxu1 %v1716_v21  ;;  %434 = vmatprep.subr.bf16.mxu0 %v1702_v18 }
  0x36   :  { %1328 = vmatprep.subr.bf16.mxu1 %v1572_v23 }
  0x38   :  { %1325 = vmatmul.mubr.msk.bf16.gmra.mrb[4].mxu1 %vm127_vm0, %v69_v22  ;;  %435 = vmatpush1.bf16.msra.mxu0 %v1716_v21 }
  0x39   :  { %362 = vmatprep.mubr.bf16.mxu1 %v1571_v0  ;;  %534 = vmatprep.subr.bf16.mxu0 %v1672_v8 }
  0x3b   :  { %1249 = vmatmul.mubr.msk.bf16.gmra.mrb[4].mxu0 %vm127_vm0, %v67_v11 }
  0x3c   :  { %192 = vmatprep.mubr.bf16.mxu0 %v1571_v0 }
  0x40   :  { %1263 = vmatmul.mubr.msk.bf16.vlgmr.msra.gmra.mrb[8].mxu1 %vm127_vm0, %v286_v25 }
  0x41   :  { %1329 = vmatpush3.bf16.msra.mxu1 %v1737_v26  ;;  %1332 = vmatprep.mubr.msk.bf16.mxu1 %vm1573_vm1, %v1572_v23 }
  0x42   :  { %1330 = vmatprep.subr.bf16.mxu1 %v1572_v23 }
  0x43   :  { %1250 = vmatmul.mubr.msk.bf16.gmra.mrb[8].mxu0 %vm127_vm0, %v68_v15 }
  0x44   :  { %202 = vmatprep.mubr.bf16.mxu0 %v1571_v0 }
  0x45   :  { %1331 = vmatpush3.bf16.msra.mxu1 %v1746_v27 }
  0x46   :  { %1336 = vmatprep.subr.bf16.mxu1 %v1572_v23 }
  0x48   :  { %1333 = vmatmul.mubr.msk.bf16.vlgmr.msra.gmra.mrb[12].mxu1 %vm127_vm0, %v286_v25 }
  0x49   :  { %1337 = vmatpush3.bf16.msra.mxu1 %v1737_v26  ;;  %1340 = vmatprep.mubr.msk.bf16.mxu1 %vm1573_vm1, %v1572_v23 }
  0x4a   :  { %1338 = vmatprep.subr.bf16.mxu1 %v1572_v23 }
  0x4b   :  { %1251 = vmatmul.mubr.msk.bf16.gmra.mrb[12].mxu0 %vm127_vm0, %v69_v22 }
  0x4c   :  { %464 = vmatprep.mubr.bf16.mxu0 %v1571_v0 }
  0x4d   :  { %1339 = vmatpush3.bf16.msra.mxu1 %v1746_v27 }
  0x4e   :  { %1344 = vmatprep.subr.bf16.mxu1 %v1572_v23 }
 0x103   :  { %v1322_v33 = vpop.f32.mrb[0].mxu1 }
 0x104   :  { %v1767_v35 = vadd.f32 %v1322_v33, %v1764_v32  ;;  %v1769_v36 = vpop.f32.mrb[1].mxu1  ;;  %v1812_v33 = vld [vmem:[%s1976_s5] ss:$0 sm:$0xff] }
 0x105   :  { %v1323_v38 = vpop.f32.mrb[2].mxu1 }
 0x106   :  { %v1772_v39 = vadd.f32 %v1323_v38, %v1764_v32  ;;  %v250_v40 = vpop.f32.mrb[3].mxu1  ;;  %v174_v43 = vpop.f32.mrb[0].mxu0 }
 0x107   :  { %v1775_v41 = vadd.f32 %v250_v40, %v1764_v32  ;;  %v176_v45 = vpop.f32.mrb[1].mxu0  ;;  %v175_v58 = vadd.f32 %v174_v43, %v83_v42 }
 0x108   :  { %v178_v46 = vpop.f32.mrb[2].mxu0  ;;  %v177_v60 = vadd.f32 %v176_v45, %v87_v44 }
 0x109   :  { %v1777_v48 = vadd.f32 %v178_v46, %v83_v42  ;;  %v180_v49 = vpop.f32.mrb[3].mxu0 }
 0x10a   :  { %v1782_v52 = vadd.f32 %v180_v49, %v87_v44 }
 0x10b   :  { %v1326_v47 = vpop.f32.mrb[4].mxu1 }
 0x10c   :  { %v1780_v50 = vadd.f32 %v1326_v47, %v1764_v32  ;;  %v263_v51 = vpop.f32.mrb[5].mxu1 }
 0x10d   :  { %v1785_v53 = vadd.f32 %v263_v51, %v1764_v32  ;;  %v1327_v54 = vpop.f32.mrb[6].mxu1 }
 0x10e   :  { %v1788_v55 = vadd.f32 %v1327_v54, %v1764_v32  ;;  %v266_v56 = vpop.f32.mrb[7].mxu1  ;;  %v184_v59 = vpop.f32.mrb[4].mxu0 }
 0x10f   :  { %v1791_v57 = vadd.f32 %v266_v56, %v1764_v32  ;;  %v1793_v61 = vadd.f32 %v184_v59, %v83_v42  ;;  %v186_v62 = vpop.f32.mrb[5].mxu0  ;;  %v248_v59 = vadd.f32 %v1769_v36, %v1764_v32 }
 0x110   :  { %v1795_v63 = vadd.f32 %v186_v62, %v87_v44  ;;  %v188_v1 = vpop.f32.mrb[6].mxu0 }
 0x111   :  { %v1797_v3 = vadd.f32 %v188_v1, %v83_v42  ;;  %v190_v4 = vpop.f32.mrb[7].mxu0 }
 0x112   :  { %v1799_v7 = vadd.f32 %v190_v4, %v87_v44 }
 0x113   :  { %v364_v2 = vpop.f32.mrb[8].mxu1 }
 0x114   :  { %v411_v5 = vadd.f32 %v364_v2, %v175_v58  ;;  %v366_v6 = vpop.f32.mrb[9].mxu1 }
 0x115   :  { %v416_v9 = vadd.f32 %v366_v6, %v177_v60  ;;  %v368_v10 = vpop.f32.mrb[10].mxu1 }
 0x116   :  { %v412_v11 = vmul.f32 0.5, %v411_v5  ;;  %v369_v12 = vpop.f32.mrb[11].mxu1  ;;  %v194_v13 = vpop.f32.mrb[8].mxu0 }
 0x117   :  { %v1801_v15 = vadd.f32 %v194_v13, %v83_v42  ;;  %v196_v16 = vpop.f32.mrb[9].mxu0  ;;  %v417_v37 = vmul.f32 0.5, %v416_v9 }
 0x118   :  { %1425 = vtanh.f32 %v412_v11  ;;  %v1803_v17 = vadd.f32 %v196_v16, %v87_v44  ;;  %v198_v19 = vpop.f32.mrb[10].mxu0 }
 0x119   :  { %v1805_v22 = vadd.f32 %v198_v19, %v83_v42  ;;  %v200_v25 = vpop.f32.mrb[11].mxu0  ;;  %1427 = vtanh.f32 %v417_v37 }
 0x11a   :  { %v1807_v29 = vadd.f32 %v200_v25, %v87_v44 }
 0x11b   :  { %v405_v20 = vpop.f32.mrb[12].mxu1 }
 0x11c   :  { %v1334_v28 = vpop.f32.mrb[13].mxu1  ;;  %v421_v49 = vadd.f32 %v1812_v33, %v405_v20 }
 0x11d   :  { %v408_v30 = vpop.f32.mrb[14].mxu1 }
 0x11e   :  { %v1335_v31 = vpop.f32.mrb[15].mxu1  ;;  %v204_v34 = vpop.f32.mrb[12].mxu0 }
 0x11f   :  { %v1814_v38 = vadd.f32 %v204_v34, %v83_v42  ;;  %v206_v40 = vpop.f32.mrb[13].mxu0 }
 0x120   :  { %v1816_v45 = vadd.f32 %v206_v40, %v87_v44  ;;  %v208_v46 = vpop.f32.mrb[14].mxu0 }
 0x121   :  { %v1819_v51 = vadd.f32 %v208_v46, %v83_v42  ;;  %v210_v54 = vpop.f32.mrb[15].mxu0 }
 0x122   :  { %v1426_v43 = vpop.eup %1425  ;;  %v1821_v56 = vadd.f32 %v210_v54, %v87_v44 }
 0x123   :  { %v414_v47 = vmul.f32 0.5, %v1426_v43  ;;  %v1428_v1 = vpop.eup %1427 }
 0x124   :  { %v419_v2 = vmul.f32 0.5, %v1428_v1 }
 0x125   :  { %v415_v58 = vadd.f32 0.5, %v414_v47 }
 0x126   :  { %v420_v5 = vadd.f32 0.5, %v419_v2 }
 0x127   :  { %v422_v60 = vmul.f32 %v421_v49, %v415_v58 }
 0x129   :  { %v423_v62 = vadd.f32 %v422_v60, %v248_v59 }
 0x12b   :  { %1429 = vtanh.f32 %v423_v62 }
 0x135   :  { %v1430_v4 = vpop.eup %1429 }
 0x136   :  { %v425_v6 = vsub.f32 %v1728_v24, %v1430_v4 }
 0x138   :  { %v426_v9 = vmul.f32 %v425_v6, %v420_v5 }
 0x13a   :  { %v427_v42 = vadd.f32 %v1430_v4, %v426_v9 }
 0x13c   :  { %v428_v10 = vpack.c.bf16 %v427_v42, %v427_v42 }
 0x13e   :  { %1265 = vmatmul.mubr.msk.bf16.vlgmr.msra.gmra.mrb[16].mxu0 %vm127_vm0, %v428_v10  ;;  %1341 = vmatmul.mubr.msk.bf16.vlgmr.msra.gmra.mrb[16].mxu1 %vm127_vm0, %v428_v10 }
 0x13f   :  { %535 = vmatpush1.bf16.msra.mxu0 %v1690_v14  ;;  %1345 = vmatpush3.bf16.msra.mxu1 %v1737_v26 }
 0x140   :  { %536 = vmatprep.subr.bf16.mxu0 %v1702_v18  ;;  %1346 = vmatprep.subr.bf16.mxu1 %v1572_v23 }
 0x141   :  { %566 = vmatprep.mubr.bf16.mxu0 %v1571_v0  ;;  %1348 = vmatprep.mubr.msk.bf16.mxu1 %vm1573_vm1, %v1572_v23 }
 0x143   :  { %537 = vmatpush1.bf16.msra.mxu0 %v1716_v21  ;;  %1347 = vmatpush3.bf16.msra.mxu1 %v1746_v27 }
 0x144   :  { %636 = vmatprep.subr.bf16.mxu0 %v1672_v8  ;;  %1352 = vmatprep.subr.bf16.mxu1 %v1572_v23 }
 0x211   :  { %v466_v24 = vpop.f32.mrb[16].mxu0  ;;  %v507_v32 = vpop.f32.mrb[16].mxu1 }
 0x212   :  { %v513_v36 = vadd.f32 %v466_v24, %v1777_v48  ;;  %v468_v44 = vpop.f32.mrb[17].mxu0  ;;  %v1342_v11 = vpop.f32.mrb[17].mxu1  ;;  %v523_v37 = vadd.f32 %v1812_v33, %v507_v32 }
 0x213   :  { %v518_v12 = vadd.f32 %v468_v44, %v1782_v52  ;;  %v470_v13 = vpop.f32.mrb[18].mxu0  ;;  %v510_v16 = vpop.f32.mrb[18].mxu1 }
 0x214   :  { %v514_v19 = vmul.f32 0.5, %v513_v36  ;;  %v471_v20 = vpop.f32.mrb[19].mxu0  ;;  %v1343_v25 = vpop.f32.mrb[19].mxu1 }
 0x215   :  { %v519_v28 = vmul.f32 0.5, %v518_v12 }
 0x216   :  { %1431 = vtanh.f32 %v514_v19 }
 0x217   :  { %1433 = vtanh.f32 %v519_v28 }
 0x220   :  { %v1432_v30 = vpop.eup %1431 }
 0x221   :  { %v516_v31 = vmul.f32 0.5, %v1432_v30  ;;  %v1434_v43 = vpop.eup %1433 }
 0x222   :  { %v521_v46 = vmul.f32 0.5, %v1434_v43 }
 0x223   :  { %v517_v34 = vadd.f32 0.5, %v516_v31 }
 0x224   :  { %v522_v47 = vadd.f32 0.5, %v521_v46 }
 0x225   :  { %v524_v40 = vmul.f32 %v523_v37, %v517_v34 }
 0x227   :  { %v525_v48 = vadd.f32 %v524_v40, %v1775_v41 }
 0x229   :  { %1435 = vtanh.f32 %v525_v48 }
 0x233   :  { %v1436_v52 = vpop.eup %1435 }
 0x234   :  { %v527_v49 = vsub.f32 %v427_v42, %v1436_v52 }
 0x236   :  { %v528_v54 = vmul.f32 %v527_v49, %v522_v47 }
 0x238   :  { %v529_v58 = vadd.f32 %v1436_v52, %v528_v54 }
 0x23a   :  { %v530_v59 = vpack.c.bf16 %v529_v58, %v529_v58 }
 0x23c   :  { %1267 = vmatmul.mubr.msk.bf16.vlgmr.msra.gmra.mrb[20].mxu0 %vm127_vm0, %v530_v59  ;;  %1349 = vmatmul.mubr.msk.bf16.vlgmr.msra.gmra.mrb[20].mxu1 %vm127_vm0, %v530_v59 }
 0x23d   :  { %637 = vmatpush1.bf16.msra.mxu0 %v1690_v14  ;;  %1353 = vmatpush3.bf16.msra.mxu1 %v1737_v26 }
 0x23e   :  { %638 = vmatprep.subr.bf16.mxu0 %v1702_v18  ;;  %1354 = vmatprep.subr.bf16.mxu1 %v1572_v23 }
 0x23f   :  { %668 = vmatprep.mubr.bf16.mxu0 %v1571_v0  ;;  %1356 = vmatprep.mubr.msk.bf16.mxu1 %vm1573_vm1, %v1572_v23 }
 0x241   :  { %639 = vmatpush1.bf16.msra.mxu0 %v1716_v21  ;;  %1355 = vmatpush3.bf16.msra.mxu1 %v1746_v27 }
 0x242   :  { %738 = vmatprep.subr.bf16.mxu0 %v1672_v8  ;;  %1360 = vmatprep.subr.bf16.mxu1 %v1572_v23 }
 0x30f   :  { %v568_v41 = vpop.f32.mrb[20].mxu0  ;;  %v609_v60 = vpop.f32.mrb[20].mxu1 }
 0x310   :  { %v615_v62 = vadd.f32 %v568_v41, %v1793_v61  ;;  %v570_v1 = vpop.f32.mrb[21].mxu0  ;;  %v1350_v2 = vpop.f32.mrb[21].mxu1  ;;  %v625_v11 = vadd.f32 %v1812_v33, %v609_v60 }
 0x311   :  { %v620_v4 = vadd.f32 %v570_v1, %v1795_v63  ;;  %v572_v5 = vpop.f32.mrb[22].mxu0  ;;  %v612_v6 = vpop.f32.mrb[22].mxu1 }
 0x312   :  { %v616_v9 = vmul.f32 0.5, %v615_v62  ;;  %v573_v42 = vpop.f32.mrb[23].mxu0  ;;  %v1351_v10 = vpop.f32.mrb[23].mxu1 }
 0x313   :  { %v621_v24 = vmul.f32 0.5, %v620_v4 }
 0x314   :  { %1437 = vtanh.f32 %v616_v9 }
 0x315   :  { %1439 = vtanh.f32 %v621_v24 }
 0x31e   :  { %v1438_v32 = vpop.eup %1437 }
 0x31f   :  { %v618_v36 = vmul.f32 0.5, %v1438_v32  ;;  %v1440_v13 = vpop.eup %1439 }
 0x320   :  { %v623_v16 = vmul.f32 0.5, %v1440_v13 }
 0x321   :  { %v619_v44 = vadd.f32 0.5, %v618_v36 }
 0x322   :  { %v624_v19 = vadd.f32 0.5, %v623_v16 }
 0x323   :  { %v626_v12 = vmul.f32 %v625_v11, %v619_v44 }
 0x325   :  { %v627_v61 = vadd.f32 %v626_v12, %v1767_v35 }
 0x327   :  { %1441 = vtanh.f32 %v627_v61 }
 0x331   :  { %v1442_v63 = vpop.eup %1441 }
 0x332   :  { %v629_v20 = vsub.f32 %v529_v58, %v1442_v63 }
 0x334   :  { %v630_v25 = vmul.f32 %v629_v20, %v624_v19 }
 0x336   :  { %v631_v28 = vadd.f32 %v1442_v63, %v630_v25 }
 0x338   :  { %v632_v30 = vpack.c.bf16 %v631_v28, %v631_v28 }
 0x33a   :  { %1269 = vmatmul.mubr.msk.bf16.vlgmr.msra.gmra.mrb[24].mxu0 %vm127_vm0, %v632_v30  ;;  %1357 = vmatmul.mubr.msk.bf16.vlgmr.msra.gmra.mrb[24].mxu1 %vm127_vm0, %v632_v30 }
 0x33b   :  { %739 = vmatpush1.bf16.msra.mxu0 %v1690_v14  ;;  %1361 = vmatpush3.bf16.msra.mxu1 %v1737_v26 }
 0x33c   :  { %740 = vmatprep.subr.bf16.mxu0 %v1702_v18  ;;  %1362 = vmatprep.subr.bf16.mxu1 %v1572_v23 }
 0x33d   :  { %770 = vmatprep.mubr.bf16.mxu0 %v1571_v0  ;;  %1364 = vmatprep.mubr.msk.bf16.mxu1 %vm1573_vm1, %v1572_v23 }
 0x33f   :  { %741 = vmatpush1.bf16.msra.mxu0 %v1716_v21  ;;  %1363 = vmatpush3.bf16.msra.mxu1 %v1746_v27 }
 0x340   :  { %840 = vmatprep.subr.bf16.mxu0 %v1672_v8  ;;  %1368 = vmatprep.subr.bf16.mxu1 %v1572_v23 }
 0x40d   :  { %v670_v35 = vpop.f32.mrb[24].mxu0  ;;  %v711_v31 = vpop.f32.mrb[24].mxu1 }
 0x40e   :  { %v717_v34 = vadd.f32 %v670_v35, %v1797_v3  ;;  %v672_v37 = vpop.f32.mrb[25].mxu0  ;;  %v1358_v40 = vpop.f32.mrb[25].mxu1  ;;  %v727_v60 = vadd.f32 %v1812_v33, %v711_v31 }
 0x40f   :  { %v722_v48 = vadd.f32 %v672_v37, %v1799_v7  ;;  %v674_v43 = vpop.f32.mrb[26].mxu0  ;;  %v714_v46 = vpop.f32.mrb[26].mxu1 }
 0x410   :  { %v718_v52 = vmul.f32 0.5, %v717_v34  ;;  %v675_v47 = vpop.f32.mrb[27].mxu0  ;;  %v1359_v49 = vpop.f32.mrb[27].mxu1 }
 0x411   :  { %v723_v54 = vmul.f32 0.5, %v722_v48 }
 0x412   :  { %1443 = vtanh.f32 %v718_v52 }
 0x413   :  { %1445 = vtanh.f32 %v723_v54 }
 0x41c   :  { %v1444_v58 = vpop.eup %1443 }
 0x41d   :  { %v720_v59 = vmul.f32 0.5, %v1444_v58  ;;  %v1446_v1 = vpop.eup %1445 }
 0x41e   :  { %v725_v2 = vmul.f32 0.5, %v1446_v1 }
 0x41f   :  { %v721_v41 = vadd.f32 0.5, %v720_v59 }
 0x420   :  { %v726_v4 = vadd.f32 0.5, %v725_v2 }
 0x421   :  { %v728_v62 = vmul.f32 %v727_v60, %v721_v41 }
 0x423   :  { %v729_v3 = vadd.f32 %v728_v62, %v1772_v39 }
 0x425   :  { %1447 = vtanh.f32 %v729_v3 }
 0x42f   :  { %v1448_v7 = vpop.eup %1447 }
 0x430   :  { %v731_v5 = vsub.f32 %v631_v28, %v1448_v7 }
 0x432   :  { %v732_v6 = vmul.f32 %v731_v5, %v726_v4 }
 0x434   :  { %v733_v9 = vadd.f32 %v1448_v7, %v732_v6 }
 0x436   :  { %v734_v42 = vpack.c.bf16 %v733_v9, %v733_v9 }
 0x438   :  { %1271 = vmatmul.mubr.msk.bf16.vlgmr.msra.gmra.mrb[28].mxu0 %vm127_vm0, %v734_v42  ;;  %1365 = vmatmul.mubr.msk.bf16.vlgmr.msra.gmra.mrb[28].mxu1 %vm127_vm0, %v734_v42 }
 0x439   :  { %841 = vmatpush1.bf16.msra.mxu0 %v1690_v14  ;;  %1369 = vmatpush3.bf16.msra.mxu1 %v1737_v26 }
 0x43a   :  { %842 = vmatprep.subr.bf16.mxu0 %v1702_v18  ;;  %1370 = vmatprep.subr.bf16.mxu1 %v1572_v23 }
 0x43b   :  { %872 = vmatprep.mubr.bf16.mxu0 %v1571_v0  ;;  %1372 = vmatprep.mubr.msk.bf16.mxu1 %vm1573_vm1, %v1572_v23 }
 0x43d   :  { %843 = vmatpush1.bf16.msra.mxu0 %v1716_v21  ;;  %1371 = vmatpush3.bf16.msra.mxu1 %v1746_v27 }
 0x43e   :  { %942 = vmatprep.subr.bf16.mxu0 %v1672_v8  ;;  %1376 = vmatprep.subr.bf16.mxu1 %v1572_v23 }
 0x50b   :  { %v772_v39 = vpop.f32.mrb[28].mxu0  ;;  %v813_v10 = vpop.f32.mrb[28].mxu1 }
 0x50c   :  { %v819_v24 = vadd.f32 %v772_v39, %v1801_v15  ;;  %v774_v32 = vpop.f32.mrb[29].mxu0  ;;  %v1366_v36 = vpop.f32.mrb[29].mxu1  ;;  %v829_v28 = vadd.f32 %v1812_v33, %v813_v10 }
 0x50d   :  { %v824_v44 = vadd.f32 %v774_v32, %v1803_v17  ;;  %v776_v11 = vpop.f32.mrb[30].mxu0  ;;  %v816_v12 = vpop.f32.mrb[30].mxu1 }
 0x50e   :  { %v820_v61 = vmul.f32 0.5, %v819_v24  ;;  %v777_v13 = vpop.f32.mrb[31].mxu0  ;;  %v1367_v16 = vpop.f32.mrb[31].mxu1 }
 0x50f   :  { %v825_v63 = vmul.f32 0.5, %v824_v44 }
 0x510   :  { %1449 = vtanh.f32 %v820_v61 }
 0x511   :  { %1451 = vtanh.f32 %v825_v63 }
 0x51a   :  { %v1450_v19 = vpop.eup %1449 }
 0x51b   :  { %v822_v20 = vmul.f32 0.5, %v1450_v19  ;;  %v1452_v35 = vpop.eup %1451 }
 0x51c   :  { %v827_v31 = vmul.f32 0.5, %v1452_v35 }
 0x51d   :  { %v823_v25 = vadd.f32 0.5, %v822_v20 }
 0x51e   :  { %v828_v34 = vadd.f32 0.5, %v827_v31 }
 0x51f   :  { %v830_v30 = vmul.f32 %v829_v28, %v823_v25 }
 0x521   :  { %v831_v15 = vadd.f32 %v830_v30, %v1785_v53 }
 0x523   :  { %1453 = vtanh.f32 %v831_v15 }
 0x52d   :  { %v1454_v17 = vpop.eup %1453 }
 0x52e   :  { %v833_v37 = vsub.f32 %v733_v9, %v1454_v17 }
 0x530   :  { %v834_v40 = vmul.f32 %v833_v37, %v828_v34 }
 0x532   :  { %v835_v48 = vadd.f32 %v1454_v17, %v834_v40  ;;  %v1424_v17 = vld [vmem:[%s1977_s6 + $0x8] sm:$0xff]  }
 0x534   :  { %v836_v43 = vpack.c.bf16 %v835_v48, %v835_v48 }
 0x536   :  { %1273 = vmatmul.mubr.msk.bf16.vlgmr.msra.gmra.mrb[32].mxu0 %vm127_vm0, %v836_v43  ;;  %1373 = vmatmul.mubr.msk.bf16.vlgmr.msra.gmra.mrb[32].mxu1 %vm127_vm0, %v836_v43 }
 0x537   :  { %943 = vmatpush1.bf16.msra.mxu0 %v1690_v14  ;;  %1377 = vmatpush3.bf16.msra.mxu1 %v1737_v26 }
 0x538   :  { %944 = vmatprep.subr.bf16.mxu0 %v1702_v18  ;;  %1378 = vmatprep.subr.bf16.mxu1 %v1572_v23 }
 0x539   :  { %974 = vmatprep.mubr.bf16.mxu0 %v1571_v0  ;;  %1380 = vmatprep.mubr.msk.bf16.mxu1 %vm1573_vm1, %v1572_v23 }
 0x53b   :  { %945 = vmatpush1.bf16.msra.mxu0 %v1716_v21  ;;  %1379 = vmatpush3.bf16.msra.mxu1 %v1746_v27 }
 0x53c   :  { %1044 = vmatprep.subr.bf16.mxu0 %v1672_v8  ;;  %1384 = vmatprep.subr.bf16.mxu1 %v1572_v23 }
 0x609   :  { %v874_v53 = vpop.f32.mrb[32].mxu0  ;;  %v915_v46 = vpop.f32.mrb[32].mxu1 }
 0x60a   :  { %v921_v52 = vadd.f32 %v874_v53, %v1805_v22  ;;  %v876_v47 = vpop.f32.mrb[33].mxu0  ;;  %v1374_v49 = vpop.f32.mrb[33].mxu1  ;;  %v931_v7 = vadd.f32 %v1812_v33, %v915_v46 }
 0x60b   :  { %v926_v54 = vadd.f32 %v876_v47, %v1807_v29  ;;  %v878_v58 = vpop.f32.mrb[34].mxu0  ;;  %v918_v59 = vpop.f32.mrb[34].mxu1 }
 0x60c   :  { %v922_v41 = vmul.f32 0.5, %v921_v52  ;;  %v879_v60 = vpop.f32.mrb[35].mxu0  ;;  %v1375_v62 = vpop.f32.mrb[35].mxu1 }
 0x60d   :  { %v927_v3 = vmul.f32 0.5, %v926_v54 }
 0x60e   :  { %1455 = vtanh.f32 %v922_v41 }
 0x60f   :  { %1457 = vtanh.f32 %v927_v3 }
 0x618   :  { %v1456_v1 = vpop.eup %1455 }
 0x619   :  { %v924_v2 = vmul.f32 0.5, %v1456_v1  ;;  %v1458_v5 = vpop.eup %1457 }
 0x61a   :  { %v929_v6 = vmul.f32 0.5, %v1458_v5 }
 0x61b   :  { %v925_v8 = vadd.f32 0.5, %v924_v2 }
 0x61c   :  { %v930_v9 = vadd.f32 0.5, %v929_v6 }
 0x61d   :  { %v932_v4 = vmul.f32 %v931_v7, %v925_v8 }
 0x61f   :  { %v933_v22 = vadd.f32 %v932_v4, %v1791_v57 }
 0x621   :  { %1459 = vtanh.f32 %v933_v22 }
 0x62b   :  { %v1460_v29 = vpop.eup %1459 }
 0x62c   :  { %v935_v42 = vsub.f32 %v835_v48, %v1460_v29 }
 0x62e   :  { %v936_v39 = vmul.f32 %v935_v42, %v930_v9 }
 0x630   :  { %v937_v10 = vadd.f32 %v1460_v29, %v936_v39 }
 0x632   :  { %v938_v24 = vpack.c.bf16 %v937_v10, %v937_v10 }
 0x634   :  { %1275 = vmatmul.mubr.msk.bf16.vlgmr.msra.gmra.mrb[36].mxu0 %vm127_vm0, %v938_v24  ;;  %1381 = vmatmul.mubr.msk.bf16.vlgmr.msra.gmra.mrb[36].mxu1 %vm127_vm0, %v938_v24 }
 0x635   :  { %1045 = vmatpush1.bf16.msra.mxu0 %v1690_v14  ;;  %1385 = vmatpush3.bf16.msra.mxu1 %v1737_v26 }
 0x636   :  { %1046 = vmatprep.subr.bf16.mxu0 %v1702_v18  ;;  %1386 = vmatprep.subr.bf16.mxu1 %v1572_v23 }
 0x637   :  { %1076 = vmatprep.mubr.bf16.mxu0 %v1571_v0  ;;  %1388 = vmatprep.mubr.msk.bf16.mxu1 %vm1573_vm1, %v1572_v23 }
 0x639   :  { %1047 = vmatpush1.bf16.msra.mxu0 %v1716_v21  ;;  %1387 = vmatpush3.bf16.msra.mxu1 %v1746_v27 }
 0x63a   :  { %1392 = vmatprep.subr.bf16.mxu0 %v1572_v23 }
 0x707   :  { %v976_v57 = vpop.f32.mrb[36].mxu0  ;;  %v1017_v32 = vpop.f32.mrb[36].mxu1 }
 0x708   :  { %v1023_v14 = vadd.f32 %v976_v57, %v1814_v38  ;;  %v978_v26 = vpop.f32.mrb[37].mxu0  ;;  %v1382_v36 = vpop.f32.mrb[37].mxu1  ;;  %v1033_v63 = vadd.f32 %v1812_v33, %v1017_v32 }
 0x709   :  { %v1028_v18 = vadd.f32 %v978_v26, %v1816_v45  ;;  %v980_v44 = vpop.f32.mrb[38].mxu0  ;;  %v1020_v11 = vpop.f32.mrb[38].mxu1 }
 0x70a   :  { %v1024_v0 = vmul.f32 0.5, %v1023_v14  ;;  %v981_v12 = vpop.f32.mrb[39].mxu0  ;;  %v1383_v61 = vpop.f32.mrb[39].mxu1 }
 0x70b   :  { %v1029_v13 = vmul.f32 0.5, %v1028_v18 }
 0x70c   :  { %1461 = vtanh.f32 %v1024_v0 }
 0x70d   :  { %1463 = vtanh.f32 %v1029_v13 }
 0x716   :  { %v1462_v21 = vpop.eup %1461 }
 0x717   :  { %v1026_v16 = vmul.f32 0.5, %v1462_v21  ;;  %v1464_v20 = vpop.eup %1463 }
 0x718   :  { %v1031_v25 = vmul.f32 0.5, %v1464_v20 }
 0x719   :  { %v1027_v27 = vadd.f32 0.5, %v1026_v16 }
 0x71a   :  { %v1032_v28 = vadd.f32 0.5, %v1031_v25 }
 0x71b   :  { %v1034_v19 = vmul.f32 %v1033_v63, %v1027_v27 }
 0x71d   :  { %v1035_v38 = vadd.f32 %v1034_v19, %v1780_v50  ;;  %v1423_v50 = vld [vmem:[%s1977_s6] sm:$0xff]   ;;  %s1574_s6 = smov [#allocation8]  }
 0x71e   :  { %s1228_s30 = sshll.u32 %s1574_s6, 4  ;;  %s1229_s30 = int_to_ptr.vmem [resolvable:$true] %s1228_s30 }
 0x71f   :  { %1465 = vtanh.f32 %v1035_v38  ;;  %s1517_s11 = scalar_lea.vmem %s1229_s30, 128  ;;  %p1522_p3 = scmp.lt.s32.totalorder %s1229_s30, %s1229_s30 }
 0x720   :  { %p1518_p2 = scmp.ne.s32.totalorder %s1229_s30, %s1517_s11  ;;  %p1523_p4 = scmp.lt.s32.totalorder %s1517_s11, %s1517_s11 }
 0x722   :  { %p1524_p5 = por %p1523_p4, %p1522_p3 }
 0x724   :  { %p1525_p6 = pnand %p1524_p5, %p1518_p2 }
 0x729   :  { %v1466_v45 = vpop.eup %1465 }
 0x72a   :  { %v1037_v30 = vsub.f32 %v937_v10, %v1466_v45 }
 0x72c   :  { %v1038_v15 = vmul.f32 %v1037_v30, %v1032_v28 }
 0x72e   :  { %v1039_v35 = vadd.f32 %v1466_v45, %v1038_v15 }
 0x730   :  { %v1040_v31 = vpack.c.bf16 %v1039_v35, %v1039_v35 }
 0x732   :  { %1277 = vmatmul.mubr.msk.bf16.vlgmr.msra.gmra.mrb[40].mxu0 %vm127_vm0, %v1040_v31  ;;  %1389 = vmatmul.mubr.msk.bf16.vlgmr.msra.gmra.mrb[40].mxu1 %vm127_vm0, %v1040_v31 }
 0x733   :  { %1396 = vmatprep.mubr.msk.bf16.mxu0 %vm1573_vm1, %v1572_v23  ;;  %1393 = vmatpush3.bf16.msra.mxu0 %v1423_v50 }
 0x734   :  { %1394 = vmatprep.subr.bf16.mxu0 %v1572_v23 }
 0x737   :  { %1395 = vmatpush3.bf16.msra.mxu0 %v1424_v17 }
 0x805   :  { %v1078_v34 = vpop.f32.mrb[40].mxu0  ;;  %v1119_v37 = vpop.f32.mrb[40].mxu1 }
 0x806   :  { %v1125_v40 = vadd.f32 %v1078_v34, %v1819_v51  ;;  %v1080_v48 = vpop.f32.mrb[41].mxu0  ;;  %v1390_v43 = vpop.f32.mrb[41].mxu1  ;;  %v1135_v60 = vadd.f32 %v1812_v33, %v1119_v37 }
 0x807   :  { %v1130_v53 = vadd.f32 %v1080_v48, %v1821_v56  ;;  %v1082_v46 = vpop.f32.mrb[42].mxu0  ;;  %v1122_v52 = vpop.f32.mrb[42].mxu1 }
 0x808   :  { %v1126_v47 = vmul.f32 0.5, %v1125_v40  ;;  %v1083_v49 = vpop.f32.mrb[43].mxu0  ;;  %v1391_v54 = vpop.f32.mrb[43].mxu1 }
 0x809   :  { %v1131_v23 = vmul.f32 0.5, %v1130_v53 }
 0x80a   :  { %1467 = vtanh.f32 %v1126_v47 }
 0x80b   :  { %1469 = vtanh.f32 %v1131_v23 }
 0x814   :  { %v1468_v58 = vpop.eup %1467 }
 0x815   :  { %v1128_v59 = vmul.f32 0.5, %v1468_v58  ;;  %v1470_v3 = vpop.eup %1469 }
 0x816   :  { %v1133_v1 = vmul.f32 0.5, %v1470_v3 }
 0x817   :  { %v1129_v41 = vadd.f32 0.5, %v1128_v59 }
 0x818   :  { %v1134_v2 = vadd.f32 0.5, %v1133_v1 }
 0x819   :  { %v1136_v62 = vmul.f32 %v1135_v60, %v1129_v41 }
 0x81b   :  { %v1137_v51 = vadd.f32 %v1136_v62, %v1788_v55 }
 0x81d   :  { %1471 = vtanh.f32 %v1137_v51 }
 0x827   :  { %v1472_v56 = vpop.eup %1471 }
 0x828   :  { %v1139_v8 = vsub.f32 %v1039_v35, %v1472_v56 }
 0x82a   :  { %v1140_v7 = vmul.f32 %v1139_v8, %v1134_v2 }
 0x82c   :  { %v1141_v4 = vadd.f32 %v1472_v56, %v1140_v7 }
 0x82e   :  { %v1144_v22 = vpack.c.bf16 %v1141_v4, %v1141_v4  ;;  %v1142_v5 = vsel %vm127_vm0, %v1141_v4, 0.0 }
 0x82f   :  { %1143 = vst [vmem:[#allocation8] sm:$0xff] %v1142_v5 }
 0x830   :  { %1397 = vmatmul.mubr.msk.bf16.vlgmr.msra.gmra.mrb[44].mxu0 %vm127_vm0, %v1144_v22 }
 0x831   :  { %1528 = shalt.err (!%p1525_p6)
}
 0x832   :  { %s1529_s13 = scalar_lea.hbm %s1980_s9, 128 }
 0x833   :  { %p1530_p7 = scmp.ne.s32.totalorder %s1980_s9, %s1529_s13  ;;  %p1533_p8 = scmp.lt.u32.totalorder %s1529_s13, %s1980_s9 }
 0x835   :  { %p1535_p9 = pnand %p1533_p8, %p1530_p7 }
 0x837   :  { %1538 = shalt.err (!%p1535_p9)
}
 0x838   :  { %1231 = dma.vmem_to_hbm [thread:$0]  %s1229_s30, 128, %s1980_s9, [#allocation9]   ;;  %v1279_v55 = vld [vmem:[%s1978_s7] ss:$0 sm:$0xff] }
 0x839   :  { %s1575_s20 = smov [#allocation7]  }
 0x83a   :  { %s1218_s21 = sshll.u32 %s1575_s20, 4  ;;  %s1219_s21 = int_to_ptr.vmem [resolvable:$true] %s1218_s21 }
 0x83b   :  { %s1539_s22 = scalar_lea.vmem %s1219_s21, 128  ;;  %p1544_p11 = scmp.lt.s32.totalorder %s1219_s21, %s1219_s21 }
 0x83c   :  { %p1540_p10 = scmp.ne.s32.totalorder %s1219_s21, %s1539_s22  ;;  %p1545_p12 = scmp.lt.s32.totalorder %s1539_s22, %s1539_s22 }
 0x83e   :  { %p1546_p13 = por %p1545_p12, %p1544_p11 }
 0x840   :  { %p1547_p0 = pnand %p1546_p13, %p1540_p10 }
 0x903   :  { %v1205_v33 = vpop.f32.mrb[44].mxu0 }
 0x904   :  { %v1206_v6 = vadd.f32 %v1279_v55, %v1205_v33  ;;  %v1398_v29 = vpop.f32.mrb[45].mxu0 }
 0x905   :  { %v1208_v9 = vpop.f32.mrb[46].mxu0 }
 0x906   :  { %1211 = vst [vmem:[#allocation7] sm:$0xff] %v1206_v6  ;;  %v1399_v42 = vpop.f32.mrb[47].mxu0 }
 0x907   :  { %1550 = shalt.err (!%p1547_p0)
}
 0x908   :  { %s1551_s7 = scalar_lea.hbm %s1979_s8, 128 }
 0x909   :  { %p1552_p1 = scmp.ne.s32.totalorder %s1979_s8, %s1551_s7  ;;  %p1555_p2 = scmp.lt.u32.totalorder %s1551_s7, %s1979_s8 }
 0x90b   :  { %p1557_p3 = pnand %p1555_p2, %p1552_p1 }
 0x90d   :  { %1560 = shalt.err (!%p1557_p3)
}
 0x90e   :  { %1221 = dma.vmem_to_hbm [thread:$0]  %s1219_s21, 128, %s1979_s8, [#allocation4]  }
 0x90f   :  { %1565 = dma.done.wait [#allocation4], 128  }
 0x910   :  { %1566 = vsyncadd [#allocation4], 4294967168 }
 0x911   :  { %1567 = dma.done.wait [#allocation9], 128  }
 0x912   :  { %1568 = vsyncadd [#allocation9], 4294967168 }
 0x913   :  { %1238 = vsyncpa [#allocation3], 1 }
 0x914   :  { %1239 = vsyncpa [#allocation6], 1 }
 0x915   :  { %1240 = vsyncpa [#allocation4], 1 }
 0x916   :  { %1241 = vsyncpa [#allocation9], 1 }

</bundles_post_ra>
